<compile_context>
chip_gen: v7x
topology: tpu7x:2x2x1
jax: 0.10.0
libtpu: 0.0.40
codegen_flags: <defaults>
</compile_context>

<pallas_src>
import jax
import jax.numpy as jnp
from jax import lax
from jax.experimental import pallas as pl
from jax.experimental.pallas import tpu as pltpu


def aux_head_kernel(x_ref, p_ref, w1_ref, s1_ref, b1_ref, w2_ref, s2_ref,
                    b2_ref, wl_ref, bl_ref, out_ref, h1_scr):
    """One batch tile of the auxiliary head.

    x_ref  : (TB*HW, C)     activations, flattened NHWC rows (b*HW + h*W + w)
    p_ref  : (4*TB, TB*HW)  constant pooling matrix (rows are p*TB + b)
    w1_ref : (C, 128)       1x1 conv weight (transposed)
    s1/b1  : (1, 128)       folded BN1 scale / bias (f32)
    w2_ref : (4*128, 768)   2x2 conv weight, row index = tap*128 + in_channel
    s2/b2  : (1, 768)       folded BN2 scale / bias (f32)
    wl_ref : (768, NPAD)    classifier weight, lane-padded
    bl_ref : (1, NPAD)      classifier bias, lane-padded
    out_ref: (TB, NPAD)
    h1_scr : (TB, 4*128)    VMEM scratch for the tap-concatenated h1
    """
    tb = out_ref.shape[0]
    c1 = w1_ref.shape[1]                      # 128
    mm = w1_ref.dtype                         # matmul operand dtype

    x = jnp.maximum(x_ref[...], 0.0)          # ReLU(inplace) on the input
    # AvgPool(5, stride 3) on the 8x8 grid as a constant-matrix contraction.
    pooled = jnp.dot(p_ref[...], x.astype(mm),
                     preferred_element_type=jnp.float32)            # (4*TB, C)
    # 1x1 conv (C -> 128) for all 4 pooled positions at once, + BN1 + ReLU.
    h1 = jnp.dot(pooled.astype(mm), w1_ref[...],
                 preferred_element_type=jnp.float32)                # (4*TB, 128)
    h1 = jnp.maximum(h1 * s1_ref[...] + b1_ref[...], 0.0)
    # Re-layout (4*TB, 128) -> (TB, 4*128): tap p -> lanes [p*128, (p+1)*128).
    for p in range(4):
        h1_scr[:, p * c1:(p + 1) * c1] = h1[p * tb:(p + 1) * tb, :]
    # 2x2 conv (128 -> 768) as a single (TB, 512) @ (512, 768) matmul, +BN2+ReLU.
    h2 = jnp.dot(h1_scr[...].astype(mm), w2_ref[...],
                 preferred_element_type=jnp.float32)                # (TB, 768)
    h2 = jnp.maximum(h2 * s2_ref[...] + b2_ref[...], 0.0)
    # Classifier (lane-padded output, unmasked stores).
    logits = jnp.dot(h2.astype(mm), wl_ref[...],
                     preferred_element_type=jnp.float32)            # (TB, NPAD)
    out_ref[...] = logits + bl_ref[...]


def aux_head_pallas(x_nchw, params, running_stats=None,
                    matmul_dtype=jnp.float32):
    """Wrapper: NCHW input (like PyTorch) -> (B, num_classes) logits."""
    (w1_t, g1, be1, w2_t, g2, be2, wl_t, bl) = params
    B, C, H, W = x_nchw.shape
    HW = H * W
    eps = 1e-5

    # Pooled grid must be 2x2 so the 2x2 conv yields 1x1 (as in the reference).
    HO = (H - 5) // 3 + 1
    WO = (W - 5) // 3 + 1
    assert HO == 2 and WO == 2, "AuxiliaryHeadCIFAR expects 8x8 spatial input"

    C1 = w1_t.shape[0]                 # 128
    C2 = w2_t.shape[0]                 # 768
    num_classes = wl_t.shape[0]
    NPAD = ((num_classes + 127) // 128) * 128

    # ---- batch tiling (pooling matrix is O(TB^2), so keep TB modest) -----
    TB = B if B <= 16 else 16
    B_pad = ((B + TB - 1) // TB) * TB
    n_blocks = B_pad // TB

    # ---- plain-JAX glue: layout, weight rearrangement, BN folding --------
    x_flat = jnp.transpose(x_nchw, (0, 2, 3, 1)).reshape(B * HW, C)
    if B_pad != B:
        x_flat = jnp.pad(x_flat, ((0, (B_pad - B) * HW), (0, 0)))
    x_flat = x_flat.astype(matmul_dtype)

    # Constant pooling matrix P: P[p*TB + b, b*HW + hw] = 1/25 inside window p.
    win = []
    for oh in range(2):
        for ow in range(2):
            m = jnp.zeros((H, W), jnp.float32)
            m = m.at[3 * oh:3 * oh + 5, 3 * ow:3 * ow + 5].set(1.0 / 25.0)
            win.append(m.reshape(HW))
    A = jnp.stack(win)                                            # (4, HW)
    P = jnp.einsum('ph,bc->pbch', A, jnp.eye(TB, dtype=jnp.float32))
    P = P.reshape(4 * TB, TB * HW).astype(matmul_dtype)

    w1 = jnp.transpose(w1_t[:, :, 0, 0], (1, 0)).astype(matmul_dtype)   # (C,128)
    # (768,128,2,2) -> (kh,kw,in,out) -> (4*128, 768), row = tap*128 + in.
    w2 = jnp.transpose(w2_t, (2, 3, 1, 0)).reshape(4 * C1, C2).astype(matmul_dtype)

    # Inference-mode BN folding (defaults match a fresh PyTorch module).
    if running_stats is None:
        rm1 = jnp.zeros((C1,), jnp.float32); rv1 = jnp.ones((C1,), jnp.float32)
        rm2 = jnp.zeros((C2,), jnp.float32); rv2 = jnp.ones((C2,), jnp.float32)
    else:
        rm1, rv1, rm2, rv2 = running_stats
    sc1 = g1 / jnp.sqrt(rv1 + eps)
    sc2 = g2 / jnp.sqrt(rv2 + eps)
    s1 = sc1.reshape(1, C1).astype(jnp.float32)
    b1 = (be1 - rm1 * sc1).reshape(1, C1).astype(jnp.float32)
    s2 = sc2.reshape(1, C2).astype(jnp.float32)
    b2 = (be2 - rm2 * sc2).reshape(1, C2).astype(jnp.float32)

    wl = jnp.transpose(wl_t, (1, 0))                              # (768, ncls)
    wl = jnp.pad(wl, ((0, 0), (0, NPAD - num_classes))).astype(matmul_dtype)
    blp = jnp.pad(bl.reshape(1, -1),
                  ((0, 0), (0, NPAD - num_classes))).astype(jnp.float32)

    # ---- advisory cost estimate ------------------------------------------
    itemsize = jnp.dtype(matmul_dtype).itemsize
    flops = 2 * (4 * TB * TB * HW * C * n_blocks      # pooling matmul
                 + 4 * B_pad * C * C1                 # 1x1 conv
                 + B_pad * 4 * C1 * C2                # 2x2 conv
                 + B_pad * C2 * NPAD)                 # classifier
    bytes_accessed = (x_flat.size * itemsize + P.size * itemsize
                      + w1.size * itemsize + w2.size * itemsize
                      + wl.size * itemsize
                      + (s1.size + b1.size + s2.size + b2.size + blp.size) * 4
                      + B_pad * NPAD * 4)
    cost = pl.CostEstimate(flops=int(flops), transcendentals=0,
                           bytes_accessed=int(bytes_accessed))

    grid_spec = pltpu.PrefetchScalarGridSpec(
        num_scalar_prefetch=0,
        grid=(n_blocks,),
        in_specs=[
            pl.BlockSpec((TB * HW, C), lambda i: (i, 0)),        # x (batch-tiled)
            pl.BlockSpec((4 * TB, TB * HW), lambda i: (0, 0)),   # pooling matrix
            pl.BlockSpec((C, C1), lambda i: (0, 0)),             # conv1 weight
            pl.BlockSpec((1, C1), lambda i: (0, 0)),             # bn1 scale
            pl.BlockSpec((1, C1), lambda i: (0, 0)),             # bn1 bias
            pl.BlockSpec((4 * C1, C2), lambda i: (0, 0)),        # conv2 weight
            pl.BlockSpec((1, C2), lambda i: (0, 0)),             # bn2 scale
            pl.BlockSpec((1, C2), lambda i: (0, 0)),             # bn2 bias
            pl.BlockSpec((C2, NPAD), lambda i: (0, 0)),          # classifier w
            pl.BlockSpec((1, NPAD), lambda i: (0, 0)),           # classifier b
        ],
        out_specs=pl.BlockSpec((TB, NPAD), lambda i: (i, 0)),
        scratch_shapes=[pltpu.VMEM((TB, 4 * C1), jnp.float32)],
    )

    out_padded = pl.pallas_call(
        aux_head_kernel,
        out_shape=jax.ShapeDtypeStruct((B_pad, NPAD), jnp.float32),
        grid_spec=grid_spec,
        compiler_params=pltpu.CompilerParams(
            dimension_semantics=("parallel",)),
        cost_estimate=cost,
    )(x_flat, P, w1, s1, b1, w2, s2, b2, wl, blp)

    return out_padded[:B, :num_classes]


def aux_head_reference(x_nchw, params):
    """Pure-JAX NCHW reference mirroring the PyTorch forward (BN in eval mode)."""
    (w1_t, g1, be1, w2_t, g2, be2, wl_t, bl) = params
    eps = 1e-5
    x = jnp.maximum(x_nchw, 0.0)
    pooled = lax.reduce_window(x, 0.0, lax.add, (1, 1, 5, 5), (1, 1, 3, 3),
                               "VALID") / 25.0
    h1 = lax.conv_general_dilated(pooled, w1_t, (1, 1), "VALID",
                                  dimension_numbers=("NCHW", "OIHW", "NCHW"))
    s1 = g1 / jnp.sqrt(1.0 + eps)
    h1 = jnp.maximum(h1 * s1[None, :, None, None] + be1[None, :, None, None], 0.0)
    h2 = lax.conv_general_dilated(h1, w2_t, (1, 1), "VALID",
                                  dimension_numbers=("NCHW", "OIHW", "NCHW"))
    s2 = g2 / jnp.sqrt(1.0 + eps)
    h2 = jnp.maximum(h2 * s2[None, :, None, None] + be2[None, :, None, None], 0.0)
    flat = h2.reshape(x.shape[0], -1)                             # (B, 768)
    return flat @ wl_t.T + bl[None, :]


if __name__ == "__main__":
    B, C, H, W = 2, 4, 8, 8          # 8x8 spatial: the size this head is built for
    num_classes = 10

    key = jax.random.PRNGKey(0)
    ks = jax.random.split(key, 8)
    x = jax.random.normal(ks[0], (B, C, H, W), dtype=jnp.float32)

    params = (
        jax.random.normal(ks[1], (128, C, 1, 1), jnp.float32) * 0.1,     # conv1 w
        1.0 + 0.1 * jax.random.normal(ks[2], (128,), jnp.float32),       # bn1 gamma
        0.1 * jax.random.normal(ks[3], (128,), jnp.float32),             # bn1 beta
        jax.random.normal(ks[4], (768, 128, 2, 2), jnp.float32) * 0.05,  # conv2 w
        1.0 + 0.1 * jax.random.normal(ks[5], (768,), jnp.float32),       # bn2 gamma
        0.1 * jax.random.normal(ks[6], (768,), jnp.float32),             # bn2 beta
        jax.random.normal(ks[7], (num_classes, 768), jnp.float32) * 0.05,  # fc w
        jnp.linspace(-0.1, 0.1, num_classes, dtype=jnp.float32),         # fc b
    )

    ref = aux_head_reference(x, params)

    # f32 matmul path (strict check).
    out = jax.block_until_ready(aux_head_pallas(x, params))
    assert out.shape == (B, num_classes)
    err = float(jnp.max(jnp.abs(out - ref)))
    assert err < 1e-3, f"f32 max abs err {err}"

    # bf16 matmul operands (v6e/v7x-recommended), f32 accumulation; loose check.
    out_bf16 = jax.block_until_ready(
        aux_head_pallas(x, params, matmul_dtype=jnp.bfloat16))
    err_bf16 = float(jnp.max(jnp.abs(out_bf16 - ref)))
    assert err_bf16 < 1e-1, f"bf16 max abs err {err_bf16}"

    print("KERNEL_OK")
</pallas_src>

<mosaic_0001>
module attributes {stable_mosaic.version = 11 : i64} {
  func.func @aux_head_kernel(%arg0: i32, %arg1: memref<128x4xf32, #tpu.memory_space<vmem>>, %arg2: memref<8x128xf32, #tpu.memory_space<vmem>>, %arg3: memref<4x128xf32, #tpu.memory_space<vmem>>, %arg4: memref<1x128xf32, #tpu.memory_space<vmem>>, %arg5: memref<1x128xf32, #tpu.memory_space<vmem>>, %arg6: memref<512x768xf32, #tpu.memory_space<vmem>>, %arg7: memref<1x768xf32, #tpu.memory_space<vmem>>, %arg8: memref<1x768xf32, #tpu.memory_space<vmem>>, %arg9: memref<768x128xf32, #tpu.memory_space<vmem>>, %arg10: memref<1x128xf32, #tpu.memory_space<vmem>>, %arg11: memref<2x128xf32, #tpu.memory_space<vmem>>, %arg12: memref<2x512xf32, #tpu.memory_space<vmem>>) attributes {dimension_semantics = [#tpu.dimension_semantics<parallel>], iteration_bounds = array<i64: 1>, scalar_prefetch = 0 : i64, scratch_operands = 1 : i64, tpu.core_type = #tpu.core_type<tc>, window_params = [{transform_indices = @transform_0, window_bounds = array<i64: 128, 4>}, {pipeline_mode = #tpu.pipeline_mode<synchronous>, transform_indices = @transform_1, window_bounds = array<i64: 8, 128>}, {pipeline_mode = #tpu.pipeline_mode<synchronous>, transform_indices = @transform_2, window_bounds = array<i64: 4, 128>}, {pipeline_mode = #tpu.pipeline_mode<synchronous>, transform_indices = @transform_3, window_bounds = array<i64: 1, 128>}, {pipeline_mode = #tpu.pipeline_mode<synchronous>, transform_indices = @transform_4, window_bounds = array<i64: 1, 128>}, {pipeline_mode = #tpu.pipeline_mode<synchronous>, transform_indices = @transform_5, window_bounds = array<i64: 512, 768>}, {pipeline_mode = #tpu.pipeline_mode<synchronous>, transform_indices = @transform_6, window_bounds = array<i64: 1, 768>}, {pipeline_mode = #tpu.pipeline_mode<synchronous>, transform_indices = @transform_7, window_bounds = array<i64: 1, 768>}, {pipeline_mode = #tpu.pipeline_mode<synchronous>, transform_indices = @transform_8, window_bounds = array<i64: 768, 128>}, {pipeline_mode = #tpu.pipeline_mode<synchronous>, transform_indices = @transform_9, window_bounds = array<i64: 1, 128>}, {transform_indices = @transform_10, window_bounds = array<i64: 2, 128>}]} {
    %c0 = arith.constant 0 : index
    %c0_0 = arith.constant 0 : index
    %0 = vector.load %arg1[%c0, %c0_0] : memref<128x4xf32, #tpu.memory_space<vmem>>, vector<128x4xf32>
    %cst = arith.constant 0.000000e+00 : f32
    %1 = vector.broadcast %cst : f32 to vector<128x4xf32>
    %2 = arith.maximumf %0, %1 : vector<128x4xf32>
    %c0_1 = arith.constant 0 : index
    %c0_2 = arith.constant 0 : index
    %3 = vector.load %arg2[%c0_1, %c0_2] : memref<8x128xf32, #tpu.memory_space<vmem>>, vector<8x128xf32>
    %cst_3 = arith.constant dense<0.000000e+00> : vector<8x4xf32>
    %4 = tpu.matmul %3, %2, %cst_3 {dimension_numbers = #tpu.dot_dimension_numbers<[1], [0], [0], [1], [0, 0, 1, 1], [], []>} : vector<8x128xf32>, vector<128x4xf32>, vector<8x4xf32> -> vector<8x4xf32>
    %c0_4 = arith.constant 0 : index
    %c0_5 = arith.constant 0 : index
    %5 = vector.load %arg3[%c0_4, %c0_5] : memref<4x128xf32, #tpu.memory_space<vmem>>, vector<4x128xf32>
    %cst_6 = arith.constant dense<0.000000e+00> : vector<8x128xf32>
    %6 = tpu.matmul %4, %5, %cst_6 {dimension_numbers = #tpu.dot_dimension_numbers<[1], [0], [0], [1], [0, 0, 1, 1], [], []>} : vector<8x4xf32>, vector<4x128xf32>, vector<8x128xf32> -> vector<8x128xf32>
    %c0_7 = arith.constant 0 : index
    %c0_8 = arith.constant 0 : index
    %7 = vector.load %arg4[%c0_7, %c0_8] : memref<1x128xf32, #tpu.memory_space<vmem>>, vector<1x128xf32>
    %8 = vector.broadcast %7 : vector<1x128xf32> to vector<8x128xf32>
    %9 = arith.mulf %6, %8 : vector<8x128xf32>
    %c0_9 = arith.constant 0 : index
    %c0_10 = arith.constant 0 : index
    %10 = vector.load %arg5[%c0_9, %c0_10] : memref<1x128xf32, #tpu.memory_space<vmem>>, vector<1x128xf32>
    %11 = vector.broadcast %10 : vector<1x128xf32> to vector<8x128xf32>
    %12 = arith.addf %9, %11 : vector<8x128xf32>
    %cst_11 = arith.constant 0.000000e+00 : f32
    %13 = vector.broadcast %cst_11 : f32 to vector<8x128xf32>
    %14 = arith.maximumf %12, %13 : vector<8x128xf32>
    %15 = vector.extract_strided_slice %14 {offsets = [0, 0], sizes = [2, 128], strides = [1, 1]} : vector<8x128xf32> to vector<2x128xf32>
    %c0_12 = arith.constant 0 : index
    %c0_13 = arith.constant 0 : index
    %16 = vector.load %arg12[%c0_12, %c0_13] : memref<2x512xf32, #tpu.memory_space<vmem>>, vector<2x128xf32>
    tpu.vector_store %arg12[%c0_12, %c0_13], %15 {strides = array<i32>} : memref<2x512xf32, #tpu.memory_space<vmem>>, vector<2x128xf32>,
    %17 = vector.extract_strided_slice %14 {offsets = [2, 0], sizes = [2, 128], strides = [1, 1]} : vector<8x128xf32> to vector<2x128xf32>
    %c0_14 = arith.constant 0 : index
    %c128 = arith.constant 128 : index
    %18 = vector.load %arg12[%c0_14, %c128] : memref<2x512xf32, #tpu.memory_space<vmem>>, vector<2x128xf32>
    tpu.vector_store %arg12[%c0_14, %c128], %17 {strides = array<i32>} : memref<2x512xf32, #tpu.memory_space<vmem>>, vector<2x128xf32>,
    %19 = vector.extract_strided_slice %14 {offsets = [4, 0], sizes = [2, 128], strides = [1, 1]} : vector<8x128xf32> to vector<2x128xf32>
    %c0_15 = arith.constant 0 : index
    %c256 = arith.constant 256 : index
    %20 = vector.load %arg12[%c0_15, %c256] : memref<2x512xf32, #tpu.memory_space<vmem>>, vector<2x128xf32>
    tpu.vector_store %arg12[%c0_15, %c256], %19 {strides = array<i32>} : memref<2x512xf32, #tpu.memory_space<vmem>>, vector<2x128xf32>,
    %21 = vector.extract_strided_slice %14 {offsets = [6, 0], sizes = [2, 128], strides = [1, 1]} : vector<8x128xf32> to vector<2x128xf32>
    %c0_16 = arith.constant 0 : index
    %c384 = arith.constant 384 : index
    %22 = vector.load %arg12[%c0_16, %c384] : memref<2x512xf32, #tpu.memory_space<vmem>>, vector<2x128xf32>
    tpu.vector_store %arg12[%c0_16, %c384], %21 {strides = array<i32>} : memref<2x512xf32, #tpu.memory_space<vmem>>, vector<2x128xf32>,
    %c0_17 = arith.constant 0 : index
    %c0_18 = arith.constant 0 : index
    %23 = vector.load %arg12[%c0_17, %c0_18] : memref<2x512xf32, #tpu.memory_space<vmem>>, vector<2x512xf32>
    %c0_19 = arith.constant 0 : index
    %c0_20 = arith.constant 0 : index
    %24 = vector.load %arg6[%c0_19, %c0_20] : memref<512x768xf32, #tpu.memory_space<vmem>>, vector<512x768xf32>
    %cst_21 = arith.constant dense<0.000000e+00> : vector<2x768xf32>
    %25 = tpu.matmul %23, %24, %cst_21 {dimension_numbers = #tpu.dot_dimension_numbers<[1], [0], [0], [1], [0, 0, 1, 1], [], []>} : vector<2x512xf32>, vector<512x768xf32>, vector<2x768xf32> -> vector<2x768xf32>
    %c0_22 = arith.constant 0 : index
    %c0_23 = arith.constant 0 : index
    %26 = vector.load %arg7[%c0_22, %c0_23] : memref<1x768xf32, #tpu.memory_space<vmem>>, vector<1x768xf32>
    %27 = vector.broadcast %26 : vector<1x768xf32> to vector<2x768xf32>
    %28 = arith.mulf %25, %27 : vector<2x768xf32>
    %c0_24 = arith.constant 0 : index
    %c0_25 = arith.constant 0 : index
    %29 = vector.load %arg8[%c0_24, %c0_25] : memref<1x768xf32, #tpu.memory_space<vmem>>, vector<1x768xf32>
    %30 = vector.broadcast %29 : vector<1x768xf32> to vector<2x768xf32>
    %31 = arith.addf %28, %30 : vector<2x768xf32>
    %cst_26 = arith.constant 0.000000e+00 : f32
    %32 = vector.broadcast %cst_26 : f32 to vector<2x768xf32>
    %33 = arith.maximumf %31, %32 : vector<2x768xf32>
    %c0_27 = arith.constant 0 : index
    %c0_28 = arith.constant 0 : index
    %34 = vector.load %arg9[%c0_27, %c0_28] : memref<768x128xf32, #tpu.memory_space<vmem>>, vector<768x128xf32>
    %cst_29 = arith.constant dense<0.000000e+00> : vector<2x128xf32>
    %35 = tpu.matmul %33, %34, %cst_29 {dimension_numbers = #tpu.dot_dimension_numbers<[1], [0], [0], [1], [0, 0, 1, 1], [], []>} : vector<2x768xf32>, vector<768x128xf32>, vector<2x128xf32> -> vector<2x128xf32>
    %c0_30 = arith.constant 0 : index
    %c0_31 = arith.constant 0 : index
    %36 = vector.load %arg10[%c0_30, %c0_31] : memref<1x128xf32, #tpu.memory_space<vmem>>, vector<1x128xf32>
    %37 = vector.broadcast %36 : vector<1x128xf32> to vector<2x128xf32>
    %38 = arith.addf %35, %37 : vector<2x128xf32>
    %c0_32 = arith.constant 0 : index
    %c0_33 = arith.constant 0 : index
    %39 = vector.load %arg11[%c0_32, %c0_33] : memref<2x128xf32, #tpu.memory_space<vmem>>, vector<2x128xf32>
    tpu.vector_store %arg11[%c0_32, %c0_33], %38 {strides = array<i32>} : memref<2x128xf32, #tpu.memory_space<vmem>>, vector<2x128xf32>,
    return
  }
  func.func @transform_0(%arg0: i32) -> (i32, i32) {
    %c0_i32 = arith.constant 0 : i32
    %c0_i32_0 = arith.constant 0 : i32
    return %arg0, %c0_i32 : i32, i32
  }
  func.func @transform_1(%arg0: i32) -> (i32, i32) {
    %c0_i32 = arith.constant 0 : i32
    %c0_i32_0 = arith.constant 0 : i32
    %c0_i32_1 = arith.constant 0 : i32
    return %c0_i32, %c0_i32_0 : i32, i32
  }
  func.func @transform_2(%arg0: i32) -> (i32, i32) {
    %c0_i32 = arith.constant 0 : i32
    %c0_i32_0 = arith.constant 0 : i32
    %c0_i32_1 = arith.constant 0 : i32
    return %c0_i32, %c0_i32_0 : i32, i32
  }
  func.func @transform_3(%arg0: i32) -> (i32, i32) {
    %c0_i32 = arith.constant 0 : i32
    %c0_i32_0 = arith.constant 0 : i32
    %c0_i32_1 = arith.constant 0 : i32
    return %c0_i32, %c0_i32_0 : i32, i32
  }
  func.func @transform_4(%arg0: i32) -> (i32, i32) {
    %c0_i32 = arith.constant 0 : i32
    %c0_i32_0 = arith.constant 0 : i32
    %c0_i32_1 = arith.constant 0 : i32
    return %c0_i32, %c0_i32_0 : i32, i32
  }
  func.func @transform_5(%arg0: i32) -> (i32, i32) {
    %c0_i32 = arith.constant 0 : i32
    %c0_i32_0 = arith.constant 0 : i32
    %c0_i32_1 = arith.constant 0 : i32
    return %c0_i32, %c0_i32_0 : i32, i32
  }
  func.func @transform_6(%arg0: i32) -> (i32, i32) {
    %c0_i32 = arith.constant 0 : i32
    %c0_i32_0 = arith.constant 0 : i32
    %c0_i32_1 = arith.constant 0 : i32
    return %c0_i32, %c0_i32_0 : i32, i32
  }
  func.func @transform_7(%arg0: i32) -> (i32, i32) {
    %c0_i32 = arith.constant 0 : i32
    %c0_i32_0 = arith.constant 0 : i32
    %c0_i32_1 = arith.constant 0 : i32
    return %c0_i32, %c0_i32_0 : i32, i32
  }
  func.func @transform_8(%arg0: i32) -> (i32, i32) {
    %c0_i32 = arith.constant 0 : i32
    %c0_i32_0 = arith.constant 0 : i32
    %c0_i32_1 = arith.constant 0 : i32
    return %c0_i32, %c0_i32_0 : i32, i32
  }
  func.func @transform_9(%arg0: i32) -> (i32, i32) {
    %c0_i32 = arith.constant 0 : i32
    %c0_i32_0 = arith.constant 0 : i32
    %c0_i32_1 = arith.constant 0 : i32
    return %c0_i32, %c0_i32_0 : i32, i32
  }
  func.func @transform_10(%arg0: i32) -> (i32, i32) {
    %c0_i32 = arith.constant 0 : i32
    %c0_i32_0 = arith.constant 0 : i32
    return %arg0, %c0_i32 : i32, i32
  }
}

</mosaic_0001>

<bundles_post_ra>
// kernel: tpu_custom_call.1
= control target key start
LH: loop header
LB: loop body
LE: loop exit
PB: predicated region body
PF: predicated region fallthrough
CT: control target
= control target key end

     0   :  { %15 = vsyncpa [#allocation4], 0  ;;  %s2847_s0 = inlined_call_operand.vmem [shape: f32[128,4], index: 0, kind: input, shape index: {}]   ;;  %s2848_s1 = inlined_call_operand.hbm [shape: f32[8,128], index: 1, kind: input, shape index: {}]   ;;  %s2849_s2 = inlined_call_operand.hbm [shape: f32[4,128], index: 2, kind: input, shape index: {}]   ;;  %s2850_s3 = inlined_call_operand.hbm [shape: f32[1,128], index: 3, kind: input, shape index: {}]   ;;  %s2851_s4 = inlined_call_operand.hbm [shape: f32[1,128], index: 4, kind: input, shape index: {}]   ;;  %s2852_s5 = inlined_call_operand.hbm [shape: f32[512,768], index: 5, kind: input, shape index: {}]   ;;  %s2853_s6 = inlined_call_operand.hbm [shape: f32[1,768], index: 6, kind: input, shape index: {}]   ;;  %s2854_s7 = inlined_call_operand.hbm [shape: f32[1,768], index: 7, kind: input, shape index: {}]   ;;  %s2855_s8 = inlined_call_operand.hbm [shape: f32[768,128], index: 8, kind: input, shape index: {}]   ;;  %s2856_s9 = inlined_call_operand.hbm [shape: f32[1,128], index: 9, kind: input, shape index: {}]   ;;  %s2857_s10 = inlined_call_operand.hbm [shape: f32[2,128], index: 10, kind: output, shape index: {}]  }
   0x1   :  { %16 = vsyncpa [#allocation7], 0 }
   0x2   :  { %17 = vsyncpa [#allocation10], 0 }
   0x3   :  { %18 = vsyncpa [#allocation13], 0 }
   0x4   :  { %19 = vsyncpa [#allocation16], 0 }
   0x5   :  { %20 = vsyncpa [#allocation5], 0  ;;  %s2547_s13 = smov [#allocation6]   ;;  %s2548_s15 = smov [#allocation9]  }
   0x6   :  { %s39_s14 = sshll.u32 %s2547_s13, 4  ;;  %s59_s16 = sshll.u32 %s2548_s15, 4  ;;  %s40_s14 = int_to_ptr.vmem [resolvable:$true] %s39_s14  ;;  %s60_s16 = int_to_ptr.vmem [resolvable:$true] %s59_s16 }
   0x7   :  { %s2315_s19 = scalar_lea.hbm %s2849_s2, 64 }
   0x8   :  { %p2316_p0 = scmp.ne.s32.totalorder %s2849_s2, %s2315_s19  ;;  %p2319_p1 = scmp.lt.u32.totalorder %s2315_s19, %s2849_s2 }
   0xa   :  { %p2321_p2 = pnand %p2319_p1, %p2316_p0 }
   0xc   :  { %2324 = shalt.err (!%p2321_p2)
}
   0xd   :  { %s2325_s24 = scalar_lea.vmem %s40_s14, 64  ;;  %p2330_p4 = scmp.lt.s32.totalorder %s40_s14, %s40_s14 }
   0xe   :  { %p2326_p3 = scmp.ne.s32.totalorder %s40_s14, %s2325_s24  ;;  %p2331_p5 = scmp.lt.s32.totalorder %s2325_s24, %s2325_s24 }
  0x10   :  { %p2332_p6 = por %p2331_p5, %p2330_p4 }
  0x12   :  { %p2333_p7 = pnand %p2332_p6, %p2326_p3 }
  0x14   :  { %2336 = shalt.err (!%p2333_p7)
}
  0x15   :  { %42 = dma.hbm_to_vmem [thread:$0]  %s2849_s2, 64, %s40_s14, [#allocation7]  }
  0x16   :  { %s2337_s29 = scalar_lea.hbm %s2851_s4, 16 }
  0x17   :  { %p2338_p8 = scmp.ne.s32.totalorder %s2851_s4, %s2337_s29  ;;  %p2341_p9 = scmp.lt.u32.totalorder %s2337_s29, %s2851_s4 }
  0x19   :  { %p2343_p10 = pnand %p2341_p9, %p2338_p8 }
  0x1b   :  { %2346 = shalt.err (!%p2343_p10)
}
  0x1c   :  { %s2347_s15 = scalar_lea.vmem %s60_s16, 16  ;;  %s2351_s17 = scalar_lea.vmem %s60_s16, 32 }
  0x1d   :  { %p2348_p11 = scmp.ne.s32.totalorder %s60_s16, %s2347_s15  ;;  %p2352_p12 = scmp.lt.s32.totalorder %s60_s16, %s60_s16 }
  0x1e   :  { %p2353_p13 = scmp.lt.s32.totalorder %s2351_s17, %s2347_s15 }
  0x20   :  { %p2354_p0 = por %p2353_p13, %p2352_p12 }
  0x22   :  { %p2355_p1 = pnand %p2354_p0, %p2348_p11 }
  0x24   :  { %2358 = shalt.err (!%p2355_p1)
}
  0x25   :  { %62 = dma.hbm_to_vmem [thread:$0]  %s2851_s4, 16, %s60_s16, [#allocation10]  }
  0x26   :  { %s2549_s18 = smov [#allocation12]   ;;  %s2550_s20 = smov [#allocation15]  }
  0x27   :  { %s81_s19 = sshll.u32 %s2549_s18, 4  ;;  %s100_s21 = sshll.u32 %s2550_s20, 4  ;;  %s82_s19 = int_to_ptr.vmem [resolvable:$true] %s81_s19  ;;  %s2644_s21 = int_to_ptr.vmem [resolvable:$true] %s100_s21 }
  0x28   :  { %s2359_s24 = scalar_lea.hbm %s2853_s6, 96 }
  0x29   :  { %p2360_p2 = scmp.ne.s32.totalorder %s2853_s6, %s2359_s24  ;;  %p2363_p3 = scmp.lt.u32.totalorder %s2359_s24, %s2853_s6 }
  0x2b   :  { %p2365_p4 = pnand %p2363_p3, %p2360_p2 }
  0x2d   :  { %2368 = shalt.err (!%p2365_p4)
}
  0x2e   :  { %s2369_s4 = scalar_lea.vmem %s82_s19, 96  ;;  %p2374_p6 = scmp.lt.s32.totalorder %s82_s19, %s82_s19 }
  0x2f   :  { %p2370_p5 = scmp.ne.s32.totalorder %s82_s19, %s2369_s4  ;;  %p2375_p7 = scmp.lt.s32.totalorder %s2369_s4, %s2369_s4 }
  0x31   :  { %p2376_p8 = por %p2375_p7, %p2374_p6 }
  0x33   :  { %p2377_p9 = pnand %p2376_p8, %p2370_p5 }
  0x35   :  { %2380 = shalt.err (!%p2377_p9)
}
  0x36   :  { %84 = dma.hbm_to_vmem [thread:$0]  %s2853_s6, 96, %s82_s19, [#allocation13]  }
  0x37   :  { %s2381_s12 = scalar_lea.hbm %s2855_s8, 12288 }
  0x38   :  { %p2382_p10 = scmp.ne.s32.totalorder %s2855_s8, %s2381_s12  ;;  %p2385_p11 = scmp.lt.u32.totalorder %s2381_s12, %s2855_s8 }
  0x3a   :  { %p2387_p12 = pnand %p2385_p11, %p2382_p10 }
  0x3c   :  { %2390 = shalt.err (!%p2387_p12)
}
  0x3d   :  { %s2391_s14 = scalar_lea.vmem %s2644_s21, 12288  ;;  %p2396_p0 = scmp.lt.s32.totalorder %s2644_s21, %s2644_s21 }
  0x3e   :  { %p2392_p13 = scmp.ne.s32.totalorder %s2644_s21, %s2391_s14  ;;  %p2397_p1 = scmp.lt.s32.totalorder %s2391_s14, %s2391_s14 }
  0x40   :  { %p2398_p2 = por %p2397_p1, %p2396_p0 }
  0x42   :  { %p2399_p3 = pnand %p2398_p2, %p2392_p13 }
  0x44   :  { %2402 = shalt.err (!%p2399_p3)
}
  0x45   :  { %s2551_s6 = smov 128   ;;  %s2552_s18 = smov 8  }
  0x46   :  { %106 = dma.hbm_to_vmem [thread:$0]  %s2855_s8, 12288, %s2644_s21, [#allocation16], %s2551_s6, %s2551_s6, %s2552_s18  }
  0x47   :  { %s2553_s22 = smov [#allocation3]   ;;  %s2554_s24 = smov [#allocation8]  }
  0x48   :  { %s29_s23 = sshll.u32 %s2553_s22, 4  ;;  %s49_s25 = sshll.u32 %s2554_s24, 4  ;;  %s30_s23 = int_to_ptr.vmem [resolvable:$true] %s29_s23  ;;  %s50_s25 = int_to_ptr.vmem [resolvable:$true] %s49_s25 }
  0x49   :  { %s2403_s28 = scalar_lea.hbm %s2848_s1, 128 }
  0x4a   :  { %p2404_p4 = scmp.ne.s32.totalorder %s2848_s1, %s2403_s28  ;;  %p2407_p5 = scmp.lt.u32.totalorder %s2403_s28, %s2848_s1 }
  0x4c   :  { %p2409_p6 = pnand %p2407_p5, %p2404_p4 }
  0x4e   :  { %2412 = shalt.err (!%p2409_p6)
}
  0x4f   :  { %s2413_s8 = scalar_lea.vmem %s30_s23, 128  ;;  %p2418_p8 = scmp.lt.s32.totalorder %s30_s23, %s30_s23 }
  0x50   :  { %p2414_p7 = scmp.ne.s32.totalorder %s30_s23, %s2413_s8  ;;  %p2419_p9 = scmp.lt.s32.totalorder %s2413_s8, %s2413_s8 }
  0x52   :  { %p2420_p10 = por %p2419_p9, %p2418_p8 }
  0x54   :  { %p2421_p11 = pnand %p2420_p10, %p2414_p7 }
  0x56   :  { %2424 = shalt.err (!%p2421_p11)
}
  0x57   :  { %32 = dma.hbm_to_vmem [thread:$0]  %s2848_s1, 128, %s30_s23, [#allocation4]  }
  0x58   :  { %s2425_s15 = scalar_lea.hbm %s2850_s3, 16 }
  0x59   :  { %p2426_p12 = scmp.ne.s32.totalorder %s2850_s3, %s2425_s15  ;;  %p2429_p13 = scmp.lt.u32.totalorder %s2425_s15, %s2850_s3 }
  0x5b   :  { %p2431_p0 = pnand %p2429_p13, %p2426_p12 }
  0x5d   :  { %2434 = shalt.err (!%p2431_p0)
}
  0x5e   :  { %s2435_s18 = scalar_lea.vmem %s50_s25, 16  ;;  %s2439_s19 = scalar_lea.vmem %s50_s25, 32 }
  0x5f   :  { %p2436_p1 = scmp.ne.s32.totalorder %s50_s25, %s2435_s18  ;;  %p2440_p2 = scmp.lt.s32.totalorder %s50_s25, %s50_s25 }
  0x60   :  { %p2441_p3 = scmp.lt.s32.totalorder %s2439_s19, %s2435_s18 }
  0x62   :  { %p2442_p4 = por %p2441_p3, %p2440_p2 }
  0x64   :  { %p2443_p5 = pnand %p2442_p4, %p2436_p1 }
  0x66   :  { %2446 = shalt.err (!%p2443_p5)
}
  0x67   :  { %52 = dma.hbm_to_vmem [thread:$0]  %s2850_s3, 16, %s50_s25, [#allocation7]  }
  0x68   :  { %s2555_s22 = smov [#allocation11]   ;;  %s2447_s27 = scalar_lea.hbm %s2852_s5, 49152 }
  0x69   :  { %s68_s23 = sshll.u32 %s2555_s22, 4  ;;  %p2448_p6 = scmp.ne.s32.totalorder %s2852_s5, %s2447_s27  ;;  %s69_s23 = int_to_ptr.vmem [resolvable:$true] %s68_s23 }
  0x6a   :  { %p2451_p7 = scmp.lt.u32.totalorder %s2447_s27, %s2852_s5 }
  0x6c   :  { %p2453_p8 = pnand %p2451_p7, %p2448_p6 }
  0x6e   :  { %2456 = shalt.err (!%p2453_p8)
}
  0x6f   :  { %s2457_s30 = scalar_lea.vmem %s69_s23, 49152  ;;  %p2462_p10 = scmp.lt.s32.totalorder %s69_s23, %s69_s23 }
  0x70   :  { %p2458_p9 = scmp.ne.s32.totalorder %s69_s23, %s2457_s30  ;;  %p2463_p11 = scmp.lt.s32.totalorder %s2457_s30, %s2457_s30 }
  0x72   :  { %p2464_p12 = por %p2463_p11, %p2462_p10 }
  0x74   :  { %p2465_p13 = pnand %p2464_p12, %p2458_p9 }
  0x76   :  { %2468 = shalt.err (!%p2465_p13)
}
  0x77   :  { %s2556_s3 = smov 768   ;;  %s2557_s25 = smov 48  }
  0x78   :  { %74 = dma.hbm_to_vmem [thread:$0]  %s2852_s5, 49152, %s69_s23, [#allocation10], %s2556_s3, %s2556_s3, %s2557_s25  }
  0x79   :  { %s2558_s11 = smov [#allocation14]   ;;  %s2559_s13 = smov [#allocation17]  }
  0x7a   :  { %s91_s12 = sshll.u32 %s2558_s11, 4  ;;  %s113_s15 = sshll.u32 %s2559_s13, 4  ;;  %s92_s12 = int_to_ptr.vmem [resolvable:$true] %s91_s12  ;;  %s114_s15 = int_to_ptr.vmem [resolvable:$true] %s113_s15 }
  0x7b   :  { %s2469_s14 = scalar_lea.hbm %s2854_s7, 96 }
  0x7c   :  { %p2470_p0 = scmp.ne.s32.totalorder %s2854_s7, %s2469_s14  ;;  %p2473_p1 = scmp.lt.u32.totalorder %s2469_s14, %s2854_s7 }
  0x7e   :  { %p2475_p2 = pnand %p2473_p1, %p2470_p0 }
  0x80   :  { %2478 = shalt.err (!%p2475_p2)
}
  0x81   :  { %s2479_s5 = scalar_lea.vmem %s92_s12, 96  ;;  %p2484_p4 = scmp.lt.s32.totalorder %s92_s12, %s92_s12 }
  0x82   :  { %p2480_p3 = scmp.ne.s32.totalorder %s92_s12, %s2479_s5  ;;  %p2485_p5 = scmp.lt.s32.totalorder %s2479_s5, %s2479_s5 }
  0x84   :  { %p2486_p6 = por %p2485_p5, %p2484_p4 }
  0x86   :  { %p2487_p7 = pnand %p2486_p6, %p2480_p3 }
  0x88   :  { %2490 = shalt.err (!%p2487_p7)
}
  0x89   :  { %94 = dma.hbm_to_vmem [thread:$0]  %s2854_s7, 96, %s92_s12, [#allocation13]  }
  0x8a   :  { %s2491_s26 = scalar_lea.hbm %s2856_s9, 16 }
  0x8b   :  { %p2492_p8 = scmp.ne.s32.totalorder %s2856_s9, %s2491_s26  ;;  %p2495_p9 = scmp.lt.u32.totalorder %s2491_s26, %s2856_s9 }
  0x8d   :  { %p2497_p10 = pnand %p2495_p9, %p2492_p8 }
  0x8f   :  { %2500 = shalt.err (!%p2497_p10)
}
  0x90   :  { %s2501_s29 = scalar_lea.vmem %s114_s15, 16  ;;  %s2505_s30 = scalar_lea.vmem %s114_s15, 32 }
  0x91   :  { %p2502_p11 = scmp.ne.s32.totalorder %s114_s15, %s2501_s29  ;;  %p2506_p12 = scmp.lt.s32.totalorder %s114_s15, %s114_s15 }
  0x92   :  { %p2507_p13 = scmp.lt.s32.totalorder %s2505_s30, %s2501_s29 }
  0x94   :  { %p2508_p0 = por %p2507_p13, %p2506_p12 }
  0x96   :  { %p2509_p1 = pnand %p2508_p0, %p2502_p11 }
  0x98   :  { %2512 = shalt.err (!%p2509_p1)
}
  0x99   :  { %116 = dma.hbm_to_vmem [thread:$0]  %s2856_s9, 16, %s114_s15, [#allocation16]  }
  0x9a   :  { %2535 = dma.done.wait [#allocation4], 128  }
  0x9b   :  { %2536 = vsyncadd [#allocation4], 4294967168 }
  0x9c   :  { %2537 = dma.done.wait [#allocation7], 80  }
  0x9d   :  { %2538 = vsyncadd [#allocation7], 4294967216 }
  0x9e   :  { %2539 = dma.done.wait [#allocation10], 49168  }
  0x9f   :  { %2540 = vsyncadd [#allocation10], 4294918128 }
  0xa0   :  { %2541 = dma.done.wait [#allocation13], 192  }
  0xa1   :  { %2542 = vsyncadd [#allocation13], 4294967104 }
  0xa2   :  { %2543 = dma.done.wait [#allocation16], 12304  }
  0xa3   :  { %2544 = vsyncadd [#allocation16], 4294954992  ;;  %v2560_v0 = vmov 0.0|0.0   ;;  %vm2561_vm0 = vmmov 0   ;;  %v2562_v1 = vmov 0.0   ;;  %v144_v2 = vld [vmem:[%s2847_s0] sm:$0xff] }
  0xa4   :  { %1786 = vmatprep.subr.bf16.mxu0 %v2560_v0  ;;  %1778 = vmatprep.mubr.msk.f32.mxu0 %vm2561_vm0, %v2562_v1  ;;  %v145_v3 = vld [vmem:[%s2847_s0 + $0x8] sm:$0xff]  ;;  %v146_v4 = vld [vmem:[%s2847_s0 + $0x10] sm:$0xff]  ;;  %v160_v5 = vmax.f32 %v144_v2, 0.0  ;;  %v147_v7 = vld [vmem:[%s2847_s0 + $0x18] sm:$0xff]  ;;  %vm252_vm1 = vcmask 1043456   ;;  %vm248_vm2 = vcmask 31744  }
  0xa5   :  { %1781 = vmatprep.subr.mxu1 %v2562_v1  ;;  %1783 = vmatprep.mubr.msk.f32.mxu1 %vm2561_vm0, %v2562_v1  ;;  %v161_v6 = vmax.f32 %v145_v3, 0.0  ;;  %v162_v8 = vmax.f32 %v146_v4, 0.0  ;;  %v163_v9 = vmax.f32 %v147_v7, 0.0  ;;  %v148_v10 = vld [vmem:[%s2847_s0 + $0x20] sm:$0xff]  ;;  %v149_v11 = vld [vmem:[%s2847_s0 + $0x28] sm:$0xff]  ;;  %v150_v16 = vld [vmem:[%s2847_s0 + $0x30] sm:$0xff] }
  0xa6   :  { %v164_v14 = vmax.f32 %v148_v10, 0.0  ;;  %v165_v15 = vmax.f32 %v149_v11, 0.0  ;;  %v151_v17 = vld [vmem:[%s2847_s0 + $0x38] sm:$0xff]  ;;  %v166_v19 = vmax.f32 %v150_v16, 0.0  ;;  %v152_v21 = vld [vmem:[%s2847_s0 + $0x40] sm:$0xff]  ;;  %v153_v22 = vld [vmem:[%s2847_s0 + $0x48] sm:$0xff] }
  0xa7   :  { %v1787_v12 = vpack.c.bf16 %v161_v6, %v160_v5  ;;  %v1790_v13 = vpack.c.bf16 %v163_v9, %v162_v8  ;;  %v167_v20 = vmax.f32 %v151_v17, 0.0  ;;  %v168_v24 = vmax.f32 %v152_v21, 0.0  ;;  %v154_v26 = vld [vmem:[%s2847_s0 + $0x50] sm:$0xff]  ;;  %v155_v27 = vld [vmem:[%s2847_s0 + $0x58] sm:$0xff]  ;;  %v156_v31 = vld [vmem:[%s2847_s0 + $0x60] sm:$0xff] }
  0xa8   :  { %v1793_v18 = vpack.c.bf16 %v165_v15, %v164_v14  ;;  %v169_v25 = vmax.f32 %v153_v22, 0.0  ;;  %v170_v29 = vmax.f32 %v154_v26, 0.0  ;;  %v171_v30 = vmax.f32 %v155_v27, 0.0  ;;  %v157_v32 = vld [vmem:[%s2847_s0 + $0x68] sm:$0xff]  ;;  %v158_v36 = vld [vmem:[%s2847_s0 + $0x70] sm:$0xff]  ;;  %v159_v37 = vld [vmem:[%s2847_s0 + $0x78] sm:$0xff] }
  0xa9   :  { %1788 = vmatpush3.bf16.msra.mxu0 %v1787_v12  ;;  %v1796_v23 = vpack.c.bf16 %v167_v20, %v166_v19  ;;  %v172_v34 = vmax.f32 %v156_v31, 0.0  ;;  %v173_v35 = vmax.f32 %v157_v32, 0.0  ;;  %v174_v39 = vmax.f32 %v158_v36, 0.0  ;;  %v176_v42 = vld [vmem:[#allocation3] sm:$0xff]  ;;  %v247_v43 = vld [vmem:[#allocation6] sm:$0xf] }
  0xaa   :  { %1789 = vmatprep.subr.bf16.mxu0 %v2560_v0  ;;  %v1799_v28 = vpack.c.bf16 %v169_v25, %v168_v24  ;;  %v1802_v33 = vpack.c.bf16 %v171_v30, %v170_v29  ;;  %v175_v40 = vmax.f32 %v159_v37, 0.0  ;;  %1782 = vmatpush3.msk.msra.mxu1 %vm252_vm1, %v247_v43  ;;  %v370_v44 = vld [vmem:[#allocation11 + $0x8] sm:$0xff]  ;;  %v376_v45 = vld [vmem:[#allocation11 + $0x38] sm:$0xff]  ;;  %v371_v50 = vld [vmem:[#allocation11 + $0x10] sm:$0xff]  ;;  %s2564_s0 = smov [#allocation18]  }
  0xab   :  { %v1805_v38 = vpack.c.bf16 %v173_v35, %v172_v34  ;;  %v372_v46 = vld [vmem:[#allocation11 + $0x18] sm:$0xff]  ;;  %v1810_v47 = vpack.c.bf16 %v376_v45, %v370_v44  ;;  %v378_v48 = vld [vmem:[#allocation11 + $0x48] sm:$0xff]  ;;  %v377_v51 = vld [vmem:[#allocation11 + $0x40] sm:$0xff]  ;;  %s1603_s21 = sshll.u32 %s2564_s0, 4  ;;  %s1604_s21 = int_to_ptr.vmem [resolvable:$true] %s1603_s21 }
  0xac   :  { %v1808_v41 = vpack.c.bf16 %v175_v40, %v174_v39  ;;  %v1938_v49 = vpack.c.bf16 %v378_v48, %v372_v46  ;;  %v1940_v52 = vpack.c.bf16 %v377_v51, %v371_v50  ;;  %v384_v53 = vld [vmem:[#allocation11 + $0x78] sm:$0xff]  ;;  %v390_v54 = vld [vmem:[#allocation11 + $0xa8] sm:$0xff]  ;;  %v383_v56 = vld [vmem:[#allocation11 + $0x70] sm:$0xff]  ;;  %s2513_s11 = scalar_lea.vmem %s1604_s21, 32  ;;  %p2518_p3 = scmp.lt.s32.totalorder %s1604_s21, %s1604_s21 }
  0xad   :  { %1791 = vmatpush3.bf16.msra.mxu0 %v1790_v13  ;;  %1811 = vmatprep.subr.bf16.mxu1 %v1810_v47  ;;  %v1942_v55 = vpack.c.bf16 %v390_v54, %v384_v53  ;;  %v389_v57 = vld [vmem:[#allocation11 + $0xa0] sm:$0xff]  ;;  %v396_v59 = vld [vmem:[#allocation11 + $0xd8] sm:$0xff]  ;;  %v402_v60 = vld [vmem:[#allocation11 + $0x108] sm:$0xff]  ;;  %p2514_p2 = scmp.ne.s32.totalorder %s1604_s21, %s2513_s11  ;;  %p2519_p4 = scmp.lt.s32.totalorder %s2513_s11, %s2513_s11 }
  0xae   :  { %1792 = vmatprep.subr.bf16.mxu0 %v2560_v0  ;;  %v1944_v58 = vpack.c.bf16 %v389_v57, %v383_v56  ;;  %v1946_v61 = vpack.c.bf16 %v402_v60, %v396_v59  ;;  %v395_v62 = vld [vmem:[#allocation11 + $0xd0] sm:$0xff]  ;;  %v401_v63 = vld [vmem:[#allocation11 + $0x100] sm:$0xff]  ;;  %v408_v1 = vld [vmem:[#allocation11 + $0x138] sm:$0xff] }
  0xaf   :  { %v414_v2 = vld [vmem:[#allocation11 + $0x168] sm:$0xff]  ;;  %v407_v4 = vld [vmem:[#allocation11 + $0x130] sm:$0xff]  ;;  %v413_v5 = vld [vmem:[#allocation11 + $0x160] sm:$0xff]  ;;  %p2520_p5 = por %p2519_p4, %p2518_p3 }
  0xb0   :  { %v1950_v3 = vpack.c.bf16 %v414_v2, %v408_v1  ;;  %v1952_v6 = vpack.c.bf16 %v413_v5, %v407_v4  ;;  %v420_v7 = vld [vmem:[#allocation11 + $0x198] sm:$0xff]  ;;  %v426_v8 = vld [vmem:[#allocation11 + $0x1c8] sm:$0xff]  ;;  %v419_v10 = vld [vmem:[#allocation11 + $0x190] sm:$0xff] }
  0xb1   :  { %1794 = vmatpush3.bf16.msra.mxu0 %v1793_v18  ;;  %v1954_v9 = vpack.c.bf16 %v426_v8, %v420_v7  ;;  %v425_v11 = vld [vmem:[#allocation11 + $0x1c0] sm:$0xff]  ;;  %v432_v13 = vld [vmem:[#allocation11 + $0x1f8] sm:$0xff]  ;;  %v438_v14 = vld [vmem:[#allocation11 + $0x228] sm:$0xff]  ;;  %p2521_p6 = pnand %p2520_p5, %p2514_p2 }
  0xb2   :  { %1795 = vmatprep.subr.bf16.mxu0 %v2560_v0  ;;  %v1956_v12 = vpack.c.bf16 %v425_v11, %v419_v10  ;;  %v1958_v15 = vpack.c.bf16 %v438_v14, %v432_v13  ;;  %v431_v16 = vld [vmem:[#allocation11 + $0x1f0] sm:$0xff]  ;;  %v437_v17 = vld [vmem:[#allocation11 + $0x220] sm:$0xff]  ;;  %v444_v19 = vld [vmem:[#allocation11 + $0x258] sm:$0xff] }
  0xb3   :  { %v1960_v18 = vpack.c.bf16 %v437_v17, %v431_v16  ;;  %v450_v20 = vld [vmem:[#allocation11 + $0x288] sm:$0xff]  ;;  %v443_v22 = vld [vmem:[#allocation11 + $0x250] sm:$0xff]  ;;  %v456_v25 = vld [vmem:[#allocation11 + $0x2b8] sm:$0xff] }
  0xb4   :  { %v1962_v21 = vpack.c.bf16 %v450_v20, %v444_v19  ;;  %v462_v26 = vld [vmem:[#allocation11 + $0x2e8] sm:$0xff]  ;;  %v461_v29 = vld [vmem:[#allocation11 + $0x2e0] sm:$0xff]  ;;  %v468_v31 = vld [vmem:[#allocation11 + $0x318] sm:$0xff] }
  0xb5   :  { %1797 = vmatpush3.bf16.msra.mxu0 %v1796_v23  ;;  %v449_v23 = vld [vmem:[#allocation11 + $0x280] sm:$0xff]  ;;  %v1966_v27 = vpack.c.bf16 %v462_v26, %v456_v25  ;;  %v474_v32 = vld [vmem:[#allocation11 + $0x348] sm:$0xff]  ;;  %v467_v34 = vld [vmem:[#allocation11 + $0x310] sm:$0xff] }
  0xb6   :  { %1798 = vmatprep.subr.bf16.mxu0 %v2560_v0  ;;  %v1964_v24 = vpack.c.bf16 %v449_v23, %v443_v22  ;;  %v473_v35 = vld [vmem:[#allocation11 + $0x340] sm:$0xff]  ;;  %v480_v37 = vld [vmem:[#allocation11 + $0x378] sm:$0xff]  ;;  %v479_v40 = vld [vmem:[#allocation11 + $0x370] sm:$0xff] }
  0xb7   :  { %v1972_v36 = vpack.c.bf16 %v473_v35, %v467_v34  ;;  %v369_v43 = vld [vmem:[#allocation11] sm:$0xff]  ;;  %v375_v44 = vld [vmem:[#allocation11 + $0x30] sm:$0xff]  ;;  %v382_v45 = vld [vmem:[#allocation11 + $0x68] sm:$0xff] }
  0xb8   :  { %v388_v46 = vld [vmem:[#allocation11 + $0x98] sm:$0xff]  ;;  %v1812_v47 = vpack.c.bf16 %v375_v44, %v369_v43  ;;  %v387_v50 = vld [vmem:[#allocation11 + $0x90] sm:$0xff]  ;;  %v393_v57 = vld [vmem:[#allocation11 + $0xc0] sm:$0xff] }
  0xb9   :  { %1800 = vmatpush3.bf16.msra.mxu0 %v1799_v28  ;;  %v455_v28 = vld [vmem:[#allocation11 + $0x2b0] sm:$0xff]  ;;  %v1814_v48 = vpack.c.bf16 %v388_v46, %v382_v45  ;;  %v400_v53 = vld [vmem:[#allocation11 + $0xf8] sm:$0xff]  ;;  %v406_v59 = vld [vmem:[#allocation11 + $0x128] sm:$0xff] }
  0xba   :  { %1801 = vmatprep.subr.bf16.mxu0 %v2560_v0  ;;  %v1968_v30 = vpack.c.bf16 %v461_v29, %v455_v28  ;;  %v412_v60 = vld [vmem:[#allocation11 + $0x158] sm:$0xff]  ;;  %v418_v1 = vld [vmem:[#allocation11 + $0x188] sm:$0xff]  ;;  %v417_v5 = vld [vmem:[#allocation11 + $0x180] sm:$0xff] }
  0xbb   :  { %v424_v2 = vld [vmem:[#allocation11 + $0x1b8] sm:$0xff]  ;;  %v430_v7 = vld [vmem:[#allocation11 + $0x1e8] sm:$0xff]  ;;  %v429_v11 = vld [vmem:[#allocation11 + $0x1e0] sm:$0xff] }
  0xbc   :  { %v1826_v4 = vpack.c.bf16 %v424_v2, %v418_v1  ;;  %v436_v8 = vld [vmem:[#allocation11 + $0x218] sm:$0xff]  ;;  %v442_v13 = vld [vmem:[#allocation11 + $0x248] sm:$0xff]  ;;  %v441_v17 = vld [vmem:[#allocation11 + $0x240] sm:$0xff] }
  0xbd   :  { %1803 = vmatpush3.bf16.msra.mxu0 %v1802_v33  ;;  %v1970_v33 = vpack.c.bf16 %v474_v32, %v468_v31  ;;  %v1830_v10 = vpack.c.bf16 %v436_v8, %v430_v7  ;;  %v448_v14 = vld [vmem:[#allocation11 + $0x278] sm:$0xff]  ;;  %v454_v19 = vld [vmem:[#allocation11 + $0x2a8] sm:$0xff]  ;;  %v453_v23 = vld [vmem:[#allocation11 + $0x2a0] sm:$0xff] }
  0xbe   :  { %1804 = vmatprep.subr.bf16.mxu0 %v2560_v0  ;;  %v1834_v16 = vpack.c.bf16 %v448_v14, %v442_v13  ;;  %v460_v20 = vld [vmem:[#allocation11 + $0x2d8] sm:$0xff]  ;;  %v466_v25 = vld [vmem:[#allocation11 + $0x308] sm:$0xff]  ;;  %v465_v29 = vld [vmem:[#allocation11 + $0x300] sm:$0xff] }
  0xbf   :  { %v1838_v22 = vpack.c.bf16 %v460_v20, %v454_v19  ;;  %v472_v26 = vld [vmem:[#allocation11 + $0x338] sm:$0xff]  ;;  %v478_v31 = vld [vmem:[#allocation11 + $0x368] sm:$0xff]  ;;  %v477_v35 = vld [vmem:[#allocation11 + $0x360] sm:$0xff] }
  0xc0   :  { %v1842_v28 = vpack.c.bf16 %v472_v26, %v466_v25  ;;  %v484_v32 = vld [vmem:[#allocation11 + $0x398] sm:$0xff]  ;;  %v489_v43 = vld [vmem:[#allocation11 + $0x3c0] sm:$0xff]  ;;  %v495_v44 = vld [vmem:[#allocation11 + $0x3f0] sm:$0xff] }
  0xc1   :  { %1806 = vmatpush3.bf16.msra.mxu0 %v1805_v38  ;;  %v486_v38 = vld [vmem:[#allocation11 + $0x3a8] sm:$0xff]  ;;  %v1846_v34 = vpack.c.bf16 %v484_v32, %v478_v31  ;;  %v1852_v46 = vpack.c.bf16 %v495_v44, %v489_v43  ;;  %v515_v7 = vld [vmem:[#allocation11 + $0x490] sm:$0xff]  ;;  %v521_v8 = vld [vmem:[#allocation11 + $0x4c0] sm:$0xff] }
  0xc2   :  { %1807 = vmatprep.subr.bf16.mxu0 %v2560_v0  ;;  %v1948_v0 = vpack.c.bf16 %v401_v63, %v395_v62  ;;  %v1974_v39 = vpack.c.bf16 %v486_v38, %v480_v37  ;;  %v1822_v62 = vpack.c.bf16 %v412_v60, %v406_v59  ;;  %v405_v63 = vld [vmem:[#allocation11 + $0x120] sm:$0xff]  ;;  %v490_v38 = vld [vmem:[#allocation11 + $0x3c8] sm:$0xff]  ;;  %v503_v59 = vld [vmem:[#allocation11 + $0x430] sm:$0xff] }
  0xc3   :  { %v509_v60 = vld [vmem:[#allocation11 + $0x460] sm:$0xff]  ;;  %v522_v2 = vld [vmem:[#allocation11 + $0x4c8] sm:$0xff]  ;;  %v527_v19 = vld [vmem:[#allocation11 + $0x4f0] sm:$0xff] }
  0xc4   :  { %v534_v14 = vld [vmem:[#allocation11 + $0x528] sm:$0xff]  ;;  %v533_v20 = vld [vmem:[#allocation11 + $0x520] sm:$0xff]  ;;  %v539_v31 = vld [vmem:[#allocation11 + $0x550] sm:$0xff] }
  0xc5   :  { %1809 = vmatpush3.bf16.msra.mxu0 %v1808_v41  ;;  %v485_v41 = vld [vmem:[#allocation11 + $0x3a0] sm:$0xff]  ;;  %v546_v26 = vld [vmem:[#allocation11 + $0x588] sm:$0xff] }
  0xc6   :  { %1939 = vmatprep.subr.bf16.mxu0 %v1938_v49  ;;  %v381_v49 = vld [vmem:[#allocation11 + $0x60] sm:$0xff] }
  0xc7   :  { %v545_v32 = vld [vmem:[#allocation11 + $0x580] sm:$0xff] }
  0xc8   :  { %1779 = vmatmul.mubr.f32.vlgmr.msra.gmra.mrb[0].mxu0 %v176_v42  ;;  %v1976_v42 = vpack.c.bf16 %v485_v41, %v479_v40  ;;  %v492_v40 = vld [vmem:[#allocation11 + $0x3d8] sm:$0xff]  ;;  %v557_v44 = vld [vmem:[#allocation11 + $0x5e0] sm:$0xff] }
  0xc9   :  { %1941 = vmatpush1.bf16.msra.mxu0 %v1940_v52  ;;  %v394_v52 = vld [vmem:[#allocation11 + $0xc8] sm:$0xff] }
  0xca   :  { %1943 = vmatprep.subr.bf16.mxu0 %v1942_v55  ;;  %v1816_v55 = vpack.c.bf16 %v387_v50, %v381_v49  ;;  %v1818_v56 = vpack.c.bf16 %v400_v53, %v394_v52  ;;  %v502_v50 = vld [vmem:[#allocation11 + $0x428] sm:$0xff]  ;;  %v504_v52 = vld [vmem:[#allocation11 + $0x438] sm:$0xff] }
  0xcd   :  { %1945 = vmatpush1.bf16.msra.mxu0 %v1944_v58  ;;  %v399_v58 = vld [vmem:[#allocation11 + $0xf0] sm:$0xff] }
  0xce   :  { %1947 = vmatprep.subr.bf16.mxu0 %v1946_v61  ;;  %v1820_v61 = vpack.c.bf16 %v399_v58, %v393_v57 }
  0xd1   :  { %1949 = vmatpush1.bf16.msra.mxu0 %v1948_v0  ;;  %v411_v0 = vld [vmem:[#allocation11 + $0x150] sm:$0xff] }
  0xd2   :  { %1951 = vmatprep.subr.bf16.mxu0 %v1950_v3  ;;  %v1824_v3 = vpack.c.bf16 %v411_v0, %v405_v63  ;;  %v520_v63 = vld [vmem:[#allocation11 + $0x4b8] sm:$0xff] }
  0xd3   :  { %v516_v0 = vld [vmem:[#allocation11 + $0x498] sm:$0xff] }
  0xd5   :  { %1953 = vmatpush1.bf16.msra.mxu0 %v1952_v6  ;;  %v423_v6 = vld [vmem:[#allocation11 + $0x1b0] sm:$0xff] }
  0xd6   :  { %1955 = vmatprep.subr.bf16.mxu0 %v1954_v9  ;;  %v1828_v9 = vpack.c.bf16 %v423_v6, %v417_v5  ;;  %v1986_v5 = vpack.c.bf16 %v522_v2, %v516_v0 }
  0xd9   :  { %1957 = vmatpush1.bf16.msra.mxu0 %v1956_v12  ;;  %v435_v12 = vld [vmem:[#allocation11 + $0x210] sm:$0xff] }
  0xda   :  { %1959 = vmatprep.subr.bf16.mxu0 %v1958_v15  ;;  %v1832_v15 = vpack.c.bf16 %v435_v12, %v429_v11  ;;  %v532_v11 = vld [vmem:[#allocation11 + $0x518] sm:$0xff] }
  0xdb   :  { %v528_v12 = vld [vmem:[#allocation11 + $0x4f8] sm:$0xff] }
  0xdd   :  { %1961 = vmatpush1.bf16.msra.mxu0 %v1960_v18  ;;  %v447_v18 = vld [vmem:[#allocation11 + $0x270] sm:$0xff] }
  0xde   :  { %1963 = vmatprep.subr.bf16.mxu0 %v1962_v21  ;;  %v1836_v21 = vpack.c.bf16 %v447_v18, %v441_v17  ;;  %v1990_v17 = vpack.c.bf16 %v534_v14, %v528_v12  ;;  %v580_v14 = vld [vmem:[#allocation11 + $0x698] sm:$0xff] }
  0xe1   :  { %1965 = vmatpush1.bf16.msra.mxu0 %v1964_v24  ;;  %v459_v24 = vld [vmem:[#allocation11 + $0x2d0] sm:$0xff] }
  0xe2   :  { %1967 = vmatprep.subr.bf16.mxu0 %v1966_v27  ;;  %v1840_v27 = vpack.c.bf16 %v459_v24, %v453_v23  ;;  %v544_v23 = vld [vmem:[#allocation11 + $0x578] sm:$0xff] }
  0xe3   :  { %v540_v24 = vld [vmem:[#allocation11 + $0x558] sm:$0xff] }
  0xe5   :  { %1969 = vmatpush1.bf16.msra.mxu0 %v1968_v30  ;;  %v471_v30 = vld [vmem:[#allocation11 + $0x330] sm:$0xff] }
  0xe6   :  { %1971 = vmatprep.subr.bf16.mxu0 %v1970_v33  ;;  %v1844_v33 = vpack.c.bf16 %v471_v30, %v465_v29  ;;  %v1994_v29 = vpack.c.bf16 %v546_v26, %v540_v24  ;;  %v581_v24 = vld [vmem:[#allocation11 + $0x6a0] sm:$0xff] }
  0xe9   :  { %1973 = vmatpush1.bf16.msra.mxu0 %v1972_v36  ;;  %v483_v36 = vld [vmem:[#allocation11 + $0x390] sm:$0xff] }
  0xea   :  { %1975 = vmatprep.subr.bf16.mxu0 %v1974_v39  ;;  %v1848_v37 = vpack.c.bf16 %v483_v36, %v477_v35  ;;  %v496_v39 = vld [vmem:[#allocation11 + $0x3f8] sm:$0xff] }
  0xeb   :  { %v1850_v41 = vpack.c.bf16 %v496_v39, %v490_v38  ;;  %v556_v35 = vld [vmem:[#allocation11 + $0x5d8] sm:$0xff] }
  0xec   :  { %v552_v36 = vld [vmem:[#allocation11 + $0x5b8] sm:$0xff] }
  0xed   :  { %1977 = vmatpush1.bf16.msra.mxu0 %v1976_v42  ;;  %v498_v42 = vld [vmem:[#allocation11 + $0x408] sm:$0xff] }
  0xee   :  { %v1978_v45 = vpack.c.bf16 %v498_v42, %v492_v40  ;;  %v549_v40 = vld [vmem:[#allocation11 + $0x5a0] sm:$0xff]  ;;  %v551_v42 = vld [vmem:[#allocation11 + $0x5b0] sm:$0xff] }
  0xf0   :  { %1979 = vmatprep.subr.bf16.mxu0 %v1978_v45  ;;  %v2000_v45 = vpack.c.bf16 %v557_v44, %v551_v42  ;;  %v600_v42 = vld [vmem:[#allocation11 + $0x738] sm:$0xff] }
 0x19b   :  { %v243_v51 = vpop.f32.mrb[0].mxu0 }
 0x19c   :  { %v1780_v54 = vpop.f32.mrb[1].mxu0  ;;  %1784 = vmatmul.mubr.msk.f32.vlgmr.msra.gmra.mrb[0].mxu1 %vm248_vm2, %v243_v51  ;;  %v508_v51 = vld [vmem:[#allocation11 + $0x458] sm:$0xff] }
 0x19d   :  { %1813 = vmatpush1.bf16.msra.mxu1 %v1812_v47  ;;  %v491_v47 = vld [vmem:[#allocation11 + $0x3d0] sm:$0xff]  ;;  %v1854_v53 = vpack.c.bf16 %v508_v51, %v502_v50  ;;  %v510_v54 = vld [vmem:[#allocation11 + $0x468] sm:$0xff] }
 0x19e   :  { %1815 = vmatprep.subr.bf16.mxu1 %v1814_v48  ;;  %v497_v48 = vld [vmem:[#allocation11 + $0x400] sm:$0xff]  ;;  %v1982_v57 = vpack.c.bf16 %v510_v54, %v504_v52  ;;  %v570_v50 = vld [vmem:[#allocation11 + $0x648] sm:$0xff]  ;;  %v2563_v52 = vmov 1983009808   ;;  %v348_v54 = vlaneseq }
 0x19f   :  { %v1980_v49 = vpack.c.bf16 %v497_v48, %v491_v47  ;;  %v568_v47 = vld [vmem:[#allocation11 + $0x638] sm:$0xff] }
 0x1a0   :  { %v564_v48 = vld [vmem:[#allocation11 + $0x618] sm:$0xff] }
 0x1a1   :  { %1817 = vmatpush1.bf16.msra.mxu1 %v1816_v55  ;;  %1981 = vmatpush1.bf16.msra.mxu0 %v1980_v49  ;;  %v501_v55 = vld [vmem:[#allocation11 + $0x420] sm:$0xff]  ;;  %v2002_v51 = vpack.c.bf16 %v570_v50, %v564_v48  ;;  %v599_v50 = vld [vmem:[#allocation11 + $0x730] sm:$0xff] }
 0x1a2   :  { %1819 = vmatprep.subr.bf16.mxu1 %v1818_v56  ;;  %v507_v56 = vld [vmem:[#allocation11 + $0x450] sm:$0xff]  ;;  %1983 = vmatprep.subr.bf16.mxu0 %v1982_v57  ;;  %v2783_v57 = vshrl.u32 %v348_v54, 7  ;;  %v612_v54 = vld [vmem:[#allocation11 + $0x798] sm:$0xff] }
 0x1a3   :  { %v1856_v58 = vpack.c.bf16 %v507_v56, %v501_v55  ;;  %v1618_v55 = vld [vmem:[#allocation8] ss:$0 sm:$0xff] }
 0x1a5   :  { %1821 = vmatpush1.bf16.msra.mxu1 %v1820_v61  ;;  %v1984_v61 = vpack.c.bf16 %v509_v60, %v503_v59  ;;  %v1619_v59 = vld [vmem:[#allocation9] ss:$0 sm:$0xff] }
 0x1a6   :  { %1823 = vmatprep.subr.bf16.mxu1 %v1822_v62  ;;  %v514_v62 = vld [vmem:[#allocation11 + $0x488] sm:$0xff] }
 0x1a7   :  { %1985 = vmatpush1.bf16.msra.mxu0 %v1984_v61  ;;  %v1858_v1 = vpack.c.bf16 %v520_v63, %v514_v62 }
 0x1a8   :  { %1987 = vmatprep.subr.bf16.mxu0 %v1986_v5 }
 0x1a9   :  { %1825 = vmatpush1.bf16.msra.mxu1 %v1824_v3  ;;  %v513_v3 = vld [vmem:[#allocation11 + $0x480] sm:$0xff] }
 0x1aa   :  { %1827 = vmatprep.subr.bf16.mxu1 %v1826_v4  ;;  %v519_v4 = vld [vmem:[#allocation11 + $0x4b0] sm:$0xff] }
 0x1ab   :  { %v1860_v6 = vpack.c.bf16 %v519_v4, %v513_v3 }
 0x1ad   :  { %1829 = vmatpush1.bf16.msra.mxu1 %v1828_v9  ;;  %v1988_v9 = vpack.c.bf16 %v521_v8, %v515_v7  ;;  %v567_v7 = vld [vmem:[#allocation11 + $0x630] sm:$0xff] }
 0x1ae   :  { %1831 = vmatprep.subr.bf16.mxu1 %v1830_v10  ;;  %v526_v10 = vld [vmem:[#allocation11 + $0x4e8] sm:$0xff] }
 0x1af   :  { %1989 = vmatpush1.bf16.msra.mxu0 %v1988_v9  ;;  %v1862_v13 = vpack.c.bf16 %v532_v11, %v526_v10  ;;  %v563_v9 = vld [vmem:[#allocation11 + $0x610] sm:$0xff]  ;;  %v569_v10 = vld [vmem:[#allocation11 + $0x640] sm:$0xff] }
 0x1b0   :  { %1991 = vmatprep.subr.bf16.mxu0 %v1990_v17 }
 0x1b1   :  { %1833 = vmatpush1.bf16.msra.mxu1 %v1832_v15  ;;  %v525_v15 = vld [vmem:[#allocation11 + $0x4e0] sm:$0xff] }
 0x1b2   :  { %1835 = vmatprep.subr.bf16.mxu1 %v1834_v16  ;;  %v531_v16 = vld [vmem:[#allocation11 + $0x510] sm:$0xff] }
 0x1b3   :  { %v1864_v18 = vpack.c.bf16 %v531_v16, %v525_v15  ;;  %v576_v15 = vld [vmem:[#allocation11 + $0x678] sm:$0xff]  ;;  %v582_v16 = vld [vmem:[#allocation11 + $0x6a8] sm:$0xff] }
 0x1b5   :  { %1837 = vmatpush1.bf16.msra.mxu1 %v1836_v21  ;;  %v1992_v21 = vpack.c.bf16 %v533_v20, %v527_v19  ;;  %v2004_v19 = vpack.c.bf16 %v569_v10, %v563_v9 }
 0x1b6   :  { %1839 = vmatprep.subr.bf16.mxu1 %v1838_v22  ;;  %v538_v22 = vld [vmem:[#allocation11 + $0x548] sm:$0xff] }
 0x1b7   :  { %v1866_v25 = vpack.c.bf16 %v544_v23, %v538_v22  ;;  %1993 = vmatpush1.bf16.msra.mxu0 %v1992_v21  ;;  %v573_v21 = vld [vmem:[#allocation11 + $0x660] sm:$0xff]  ;;  %v579_v22 = vld [vmem:[#allocation11 + $0x690] sm:$0xff] }
 0x1b8   :  { %1995 = vmatprep.subr.bf16.mxu0 %v1994_v29  ;;  %v575_v23 = vld [vmem:[#allocation11 + $0x670] sm:$0xff]  ;;  %v592_v29 = vld [vmem:[#allocation11 + $0x6f8] sm:$0xff] }
 0x1b9   :  { %1841 = vmatpush1.bf16.msra.mxu1 %v1840_v27  ;;  %v537_v27 = vld [vmem:[#allocation11 + $0x540] sm:$0xff] }
 0x1ba   :  { %1843 = vmatprep.subr.bf16.mxu1 %v1842_v28  ;;  %v543_v28 = vld [vmem:[#allocation11 + $0x570] sm:$0xff] }
 0x1bb   :  { %v1868_v30 = vpack.c.bf16 %v543_v28, %v537_v27  ;;  %v2006_v28 = vpack.c.bf16 %v582_v16, %v576_v15  ;;  %v640_v15 = vld [vmem:[#allocation11 + $0x878] sm:$0xff] }
 0x1bc   :  { %v636_v16 = vld [vmem:[#allocation11 + $0x858] sm:$0xff] }
 0x1bd   :  { %1845 = vmatpush1.bf16.msra.mxu1 %v1844_v33  ;;  %v550_v33 = vld [vmem:[#allocation11 + $0x5a8] sm:$0xff] }
 0x1be   :  { %1847 = vmatprep.subr.bf16.mxu1 %v1846_v34  ;;  %v1996_v34 = vpack.c.bf16 %v545_v32, %v539_v31  ;;  %v1870_v38 = vpack.c.bf16 %v556_v35, %v550_v33  ;;  %v594_v31 = vld [vmem:[#allocation11 + $0x708] sm:$0xff]  ;;  %v1880_v32 = vpack.c.bf16 %v579_v22, %v573_v21  ;;  %v2008_v33 = vpack.c.bf16 %v581_v24, %v575_v23  ;;  %v591_v35 = vld [vmem:[#allocation11 + $0x6f0] sm:$0xff]  ;;  %v633_v22 = vld [vmem:[#allocation11 + $0x840] sm:$0xff] }
 0x1bf   :  { %v639_v23 = vld [vmem:[#allocation11 + $0x870] sm:$0xff] }
 0x1c0   :  { %1997 = vmatpush1.bf16.msra.mxu0 %v1996_v34  ;;  %v585_v34 = vld [vmem:[#allocation11 + $0x6c0] sm:$0xff] }
 0x1c1   :  { %1849 = vmatpush1.bf16.msra.mxu1 %v1848_v37  ;;  %v558_v37 = vld [vmem:[#allocation11 + $0x5e8] sm:$0xff]  ;;  %v1884_v44 = vpack.c.bf16 %v591_v35, %v585_v34  ;;  %v645_v35 = vld [vmem:[#allocation11 + $0x8a0] sm:$0xff] }
 0x1c2   :  { %1851 = vmatprep.subr.bf16.mxu1 %v1850_v41  ;;  %v1998_v39 = vpack.c.bf16 %v558_v37, %v552_v36  ;;  %v555_v41 = vld [vmem:[#allocation11 + $0x5d0] sm:$0xff] }
 0x1c3   :  { %v1872_v43 = vpack.c.bf16 %v555_v41, %v549_v40  ;;  %v598_v40 = vld [vmem:[#allocation11 + $0x728] sm:$0xff]  ;;  %v604_v41 = vld [vmem:[#allocation11 + $0x758] sm:$0xff] }
 0x1c4   :  { %1999 = vmatprep.subr.bf16.mxu0 %v1998_v39  ;;  %v593_v39 = vld [vmem:[#allocation11 + $0x700] sm:$0xff]  ;;  %v1886_v48 = vpack.c.bf16 %v604_v41, %v598_v40  ;;  %v658_v41 = vld [vmem:[#allocation11 + $0x908] sm:$0xff] }
 0x1c5   :  { %1853 = vmatpush1.bf16.msra.mxu1 %v1852_v46  ;;  %v562_v46 = vld [vmem:[#allocation11 + $0x608] sm:$0xff]  ;;  %2001 = vmatpush1.bf16.msra.mxu0 %v2000_v45  ;;  %v653_v40 = vld [vmem:[#allocation11 + $0x8e0] sm:$0xff] }
 0x1c6   :  { %1855 = vmatprep.subr.bf16.mxu1 %v1854_v53  ;;  %v1874_v49 = vpack.c.bf16 %v568_v47, %v562_v46  ;;  %2003 = vmatprep.subr.bf16.mxu0 %v2002_v51  ;;  %v346_v53 = vunpack.c.l.s4 %v2563_v52  ;;  %v597_v46 = vld [vmem:[#allocation11 + $0x720] sm:$0xff]  ;;  %v603_v47 = vld [vmem:[#allocation11 + $0x750] sm:$0xff]  ;;  %v610_v52 = vld [vmem:[#allocation11 + $0x788] sm:$0xff] }
 0x1c7   :  { %v605_v51 = vld [vmem:[#allocation11 + $0x760] sm:$0xff] }
 0x1c8   :  { %v347_v56 = vunpack.c.0.s8 %v346_v53  ;;  %v616_v53 = vld [vmem:[#allocation11 + $0x7b8] sm:$0xff] }
 0x1c9   :  { %1857 = vmatpush1.bf16.msra.mxu1 %v1856_v58 }
 0x1ca   :  { %1859 = vmatprep.subr.bf16.mxu1 %v1858_v1  ;;  %v350_v63 = vsub.s32 %v347_v56, %v2783_v57  ;;  %v1888_v56 = vpack.c.bf16 %v603_v47, %v597_v46  ;;  %v657_v47 = vld [vmem:[#allocation11 + $0x900] sm:$0xff] }
 0x1cd   :  { %1861 = vmatpush1.bf16.msra.mxu1 %v1860_v6  ;;  %v561_v6 = vld [vmem:[#allocation11 + $0x600] sm:$0xff] }
 0x1ce   :  { %1863 = vmatprep.subr.bf16.mxu1 %v1862_v13  ;;  %v574_v13 = vld [vmem:[#allocation11 + $0x668] sm:$0xff] }
 0x1cf   :  { %v1878_v27 = vpack.c.bf16 %v580_v14, %v574_v13  ;;  %v629_v13 = vld [vmem:[#allocation11 + $0x820] sm:$0xff]  ;;  %v634_v14 = vld [vmem:[#allocation11 + $0x848] sm:$0xff] }
 0x1d0   :  { %v1898_v24 = vpack.c.bf16 %v640_v15, %v634_v14  ;;  %v689_v14 = vld [vmem:[#allocation11 + $0xa00] sm:$0xff]  ;;  %v694_v15 = vld [vmem:[#allocation11 + $0xa28] sm:$0xff] }
 0x1d1   :  { %1865 = vmatpush1.bf16.msra.mxu1 %v1864_v18  ;;  %v1876_v18 = vpack.c.bf16 %v567_v7, %v561_v6  ;;  %v621_v7 = vld [vmem:[#allocation11 + $0x7e0] sm:$0xff] }
 0x1d2   :  { %1867 = vmatprep.subr.bf16.mxu1 %v1866_v25  ;;  %v586_v25 = vld [vmem:[#allocation11 + $0x6c8] sm:$0xff] }
 0x1d3   :  { %v1882_v36 = vpack.c.bf16 %v592_v29, %v586_v25  ;;  %v646_v29 = vld [vmem:[#allocation11 + $0x8a8] sm:$0xff] }
 0x1d5   :  { %1869 = vmatpush1.bf16.msra.mxu1 %v1868_v30  ;;  %v588_v30 = vld [vmem:[#allocation11 + $0x6d8] sm:$0xff] }
 0x1d6   :  { %1871 = vmatprep.subr.bf16.mxu1 %v1870_v38  ;;  %v2010_v37 = vpack.c.bf16 %v594_v31, %v588_v30  ;;  %v587_v38 = vld [vmem:[#allocation11 + $0x6d0] sm:$0xff]  ;;  %v652_v30 = vld [vmem:[#allocation11 + $0x8d8] sm:$0xff] }
 0x1d7   :  { %v2012_v45 = vpack.c.bf16 %v593_v39, %v587_v38  ;;  %v648_v31 = vld [vmem:[#allocation11 + $0x8b8] sm:$0xff]  ;;  %v647_v39 = vld [vmem:[#allocation11 + $0x8b0] sm:$0xff] }
 0x1d8   :  { %v2032_v46 = vpack.c.bf16 %v653_v40, %v647_v39  ;;  %v707_v40 = vld [vmem:[#allocation11 + $0xa90] sm:$0xff] }
 0x1d9   :  { %1873 = vmatpush1.bf16.msra.mxu1 %v1872_v43  ;;  %v606_v43 = vld [vmem:[#allocation11 + $0x768] sm:$0xff] }
 0x1da   :  { %1875 = vmatprep.subr.bf16.mxu1 %v1874_v49  ;;  %v2014_v49 = vpack.c.bf16 %v606_v43, %v600_v42  ;;  %v664_v42 = vld [vmem:[#allocation11 + $0x938] sm:$0xff] }
 0x1db   :  { %v660_v43 = vld [vmem:[#allocation11 + $0x918] sm:$0xff] }
 0x26f   :  { %v322_v58 = vpop.f32.mrb[0].mxu1 }
 0x270   :  { %v333_v60 = vmul.f32 %v1618_v55, %v322_v58  ;;  %v1785_v61 = vpop.f32.mrb[1].mxu1  ;;  %v618_v55 = vld [vmem:[#allocation11 + $0x7c8] sm:$0xff]  ;;  %v2016_v58 = vpack.c.bf16 %v605_v51, %v599_v50  ;;  %v659_v51 = vld [vmem:[#allocation11 + $0x910] sm:$0xff] }
 0x271   :  { %v1890_v61 = vpack.c.bf16 %v616_v53, %v610_v52  ;;  %v665_v52 = vld [vmem:[#allocation11 + $0x940] sm:$0xff]  ;;  %v670_v53 = vld [vmem:[#allocation11 + $0x968] sm:$0xff] }
 0x272   :  { %v341_v62 = vadd.f32 %v1619_v59, %v333_v60  ;;  %v609_v59 = vld [vmem:[#allocation11 + $0x780] sm:$0xff]  ;;  %v615_v60 = vld [vmem:[#allocation11 + $0x7b0] sm:$0xff] }
 0x274   :  { %v342_v0 = vmax.f32 %v341_v62, 0.0  ;;  %v2018_v62 = vpack.c.bf16 %v618_v55, %v612_v54  ;;  %v676_v54 = vld [vmem:[#allocation11 + $0x998] sm:$0xff] }
 0x275   :  { %v672_v55 = vld [vmem:[#allocation11 + $0x978] sm:$0xff] }
 0x276   :  { %343 = vst [vmem:[#allocation2] sm:$0x3] %v342_v0  ;;  %v351_v1 = vrot.slane %v342_v0, %v350_v63  ;;  %v355_v2 = vcombine.high %v342_v0, %v342_v0  ;;  %v617_v0 = vld [vmem:[#allocation11 + $0x7c0] sm:$0xff] }
 0x278   :  { %v352_v3 = vcombine.high %v351_v1, %v351_v1  ;;  %v362_v4 = vrot.slane %v355_v2, %v350_v63  ;;  %1620 = vst.sshfl [vmem:[#allocation2 + $0x4] sm:$0x3 pattern:$0x76325410] %v355_v2  ;;  %v622_v1 = vld [vmem:[#allocation11 + $0x7e8] sm:$0xff]  ;;  %v628_v2 = vld [vmem:[#allocation11 + $0x818] sm:$0xff] }
 0x279   :  { %v1894_v9 = vpack.c.bf16 %v628_v2, %v622_v1  ;;  %v677_v1 = vld [vmem:[#allocation11 + $0x9a0] sm:$0xff]  ;;  %v682_v2 = vld [vmem:[#allocation11 + $0x9c8] sm:$0xff] }
 0x27a   :  { %354 = vst [vmem:[#allocation2 + $0x2] sm:$0x3] %v352_v3  ;;  %v365_v5 = vcombine.high %v362_v4, %v362_v4  ;;  %v624_v3 = vld [vmem:[#allocation11 + $0x7f8] sm:$0xff]  ;;  %v630_v4 = vld [vmem:[#allocation11 + $0x828] sm:$0xff] }
 0x27b   :  { %v2022_v10 = vpack.c.bf16 %v630_v4, %v624_v3  ;;  %v688_v3 = vld [vmem:[#allocation11 + $0x9f8] sm:$0xff] }
 0x27c   :  { %367 = vst [vmem:[#allocation2 + $0x6] sm:$0x3] %v365_v5  ;;  %v1892_v5 = vpack.c.bf16 %v615_v60, %v609_v59  ;;  %v2036_v59 = vpack.c.bf16 %v665_v52, %v659_v51  ;;  %v669_v60 = vld [vmem:[#allocation11 + $0x960] sm:$0xff]  ;;  %v684_v4 = vld [vmem:[#allocation11 + $0x9d8] sm:$0xff]  ;;  %v719_v52 = vld [vmem:[#allocation11 + $0xaf0] sm:$0xff] }
 0x283   :  { %v368_v8 = vld [vmem:[#allocation2] sm:$0xff] }
 0x284   :  { %v2786_v11 = vrot.slane %v368_v8, %v350_v63  ;;  %v754_v12 = vcombine.high %v368_v8, %v368_v8  ;;  %v627_v8 = vld [vmem:[#allocation11 + $0x810] sm:$0xff] }
 0x286   :  { %v2790_v17 = vcombine.high %v2786_v11, %v2786_v11  ;;  %v2792_v20 = vrot.slane %v754_v12, %v350_v63  ;;  %v611_v63 = vld [vmem:[#allocation11 + $0x790] sm:$0xff] }
 0x287   :  { %v2020_v6 = vpack.c.bf16 %v617_v0, %v611_v63  ;;  %v623_v12 = vld [vmem:[#allocation11 + $0x7f0] sm:$0xff] }
 0x288   :  { %839 = vmatprep.mubr.f32.mxu1 %v2790_v17  ;;  %981 = vmatprep.mubr.f32.mxu0 %v2790_v17  ;;  %v2798_v26 = vcombine.high %v2792_v20, %v2792_v20  ;;  %v2024_v21 = vpack.c.bf16 %v629_v13, %v623_v12  ;;  %v671_v0 = vld [vmem:[#allocation11 + $0x970] sm:$0xff] }
 0x289   :  { %840 = vmatmul.mubr.f32.vlgmr.msra.gmra.mrb[2].mxu1 %v2786_v11  ;;  %982 = vmatmul.mubr.f32.vlgmr.msra.gmra.mrb[2].mxu0 %v2786_v11  ;;  %v683_v13 = vld [vmem:[#allocation11 + $0x9d0] sm:$0xff] }
 0x28a   :  { %1877 = vmatpush1.bf16.msra.mxu1 %v1876_v18  ;;  %2005 = vmatpush1.bf16.msra.mxu0 %v2004_v19  ;;  %v642_v18 = vld [vmem:[#allocation11 + $0x888] sm:$0xff]  ;;  %v1896_v19 = vpack.c.bf16 %v627_v8, %v621_v7  ;;  %v2040_v7 = vpack.c.bf16 %v677_v1, %v671_v0  ;;  %v681_v8 = vld [vmem:[#allocation11 + $0x9c0] sm:$0xff]  ;;  %v731_v1 = vld [vmem:[#allocation11 + $0xb50] sm:$0xff] }
 0x28b   :  { %910 = vmatprep.mubr.f32.mxu1 %v2798_v26  ;;  %1052 = vmatprep.mubr.f32.mxu0 %v2798_v26  ;;  %v2026_v25 = vpack.c.bf16 %v642_v18, %v636_v16  ;;  %v700_v16 = vld [vmem:[#allocation11 + $0xa58] sm:$0xff] }
 0x28c   :  { %1879 = vmatprep.subr.bf16.mxu1 %v1878_v27  ;;  %2007 = vmatprep.subr.bf16.mxu0 %v2006_v28  ;;  %v635_v27 = vld [vmem:[#allocation11 + $0x850] sm:$0xff]  ;;  %v641_v28 = vld [vmem:[#allocation11 + $0x880] sm:$0xff]  ;;  %v696_v18 = vld [vmem:[#allocation11 + $0xa38] sm:$0xff] }
 0x28d   :  { %v2028_v34 = vpack.c.bf16 %v641_v28, %v635_v27  ;;  %v695_v28 = vld [vmem:[#allocation11 + $0xa30] sm:$0xff] }
 0x28e   :  { %1881 = vmatpush1.bf16.msra.mxu1 %v1880_v32  ;;  %2009 = vmatpush1.bf16.msra.mxu0 %v2008_v33  ;;  %v654_v32 = vld [vmem:[#allocation11 + $0x8e8] sm:$0xff]  ;;  %v1900_v33 = vpack.c.bf16 %v639_v23, %v633_v22  ;;  %v2044_v22 = vpack.c.bf16 %v689_v14, %v683_v13  ;;  %v693_v23 = vld [vmem:[#allocation11 + $0xa20] sm:$0xff]  ;;  %v747_v13 = vld [vmem:[#allocation11 + $0xbd0] sm:$0xff] }
 0x28f   :  { %1883 = vmatprep.subr.bf16.mxu1 %v1882_v36  ;;  %2011 = vmatprep.subr.bf16.mxu0 %v2010_v37  ;;  %v651_v36 = vld [vmem:[#allocation11 + $0x8d0] sm:$0xff]  ;;  %v1902_v37 = vpack.c.bf16 %v652_v30, %v646_v29  ;;  %v2030_v38 = vpack.c.bf16 %v654_v32, %v648_v31  ;;  %v701_v29 = vld [vmem:[#allocation11 + $0xa60] sm:$0xff]  ;;  %v706_v30 = vld [vmem:[#allocation11 + $0xa88] sm:$0xff] }
 0x290   :  { %v712_v31 = vld [vmem:[#allocation11 + $0xab8] sm:$0xff]  ;;  %v743_v14 = vld [vmem:[#allocation11 + $0xbb0] sm:$0xff] }
 0x291   :  { %v708_v32 = vld [vmem:[#allocation11 + $0xa98] sm:$0xff] }
 0x292   :  { %1885 = vmatpush1.bf16.msra.mxu1 %v1884_v44  ;;  %2013 = vmatpush1.bf16.msra.mxu0 %v2012_v45  ;;  %v666_v44 = vld [vmem:[#allocation11 + $0x948] sm:$0xff]  ;;  %v1904_v45 = vpack.c.bf16 %v651_v36, %v645_v35  ;;  %v2048_v35 = vpack.c.bf16 %v701_v29, %v695_v28  ;;  %v705_v36 = vld [vmem:[#allocation11 + $0xa80] sm:$0xff] }
 0x293   :  { %1887 = vmatprep.subr.bf16.mxu1 %v1886_v48  ;;  %2015 = vmatprep.subr.bf16.mxu0 %v2014_v49  ;;  %v663_v48 = vld [vmem:[#allocation11 + $0x930] sm:$0xff]  ;;  %v1906_v49 = vpack.c.bf16 %v664_v42, %v658_v41  ;;  %v2034_v50 = vpack.c.bf16 %v666_v44, %v660_v43  ;;  %v713_v41 = vld [vmem:[#allocation11 + $0xac0] sm:$0xff]  ;;  %v718_v42 = vld [vmem:[#allocation11 + $0xae8] sm:$0xff] }
 0x294   :  { %v724_v43 = vld [vmem:[#allocation11 + $0xb18] sm:$0xff] }
 0x295   :  { %v720_v44 = vld [vmem:[#allocation11 + $0xaf8] sm:$0xff] }
 0x296   :  { %1889 = vmatpush1.bf16.msra.mxu1 %v1888_v56  ;;  %2017 = vmatpush1.bf16.msra.mxu0 %v2016_v58  ;;  %v678_v56 = vld [vmem:[#allocation11 + $0x9a8] sm:$0xff]  ;;  %v1908_v58 = vpack.c.bf16 %v663_v48, %v657_v47  ;;  %v2052_v47 = vpack.c.bf16 %v713_v41, %v707_v40  ;;  %v717_v48 = vld [vmem:[#allocation11 + $0xae0] sm:$0xff]  ;;  %v1284_v41 = vld [vmem:[#allocation15 + $0x8] sm:$0xff] }
 0x297   :  { %1891 = vmatprep.subr.bf16.mxu1 %v1890_v61  ;;  %2019 = vmatprep.subr.bf16.mxu0 %v2018_v62  ;;  %v675_v61 = vld [vmem:[#allocation11 + $0x990] sm:$0xff]  ;;  %v1910_v62 = vpack.c.bf16 %v676_v54, %v670_v53  ;;  %v2038_v63 = vpack.c.bf16 %v678_v56, %v672_v55  ;;  %v725_v53 = vld [vmem:[#allocation11 + $0xb20] sm:$0xff]  ;;  %v730_v54 = vld [vmem:[#allocation11 + $0xb48] sm:$0xff] }
 0x298   :  { %v736_v55 = vld [vmem:[#allocation11 + $0xb78] sm:$0xff] }
 0x299   :  { %v732_v56 = vld [vmem:[#allocation11 + $0xb58] sm:$0xff] }
 0x29a   :  { %1893 = vmatpush1.bf16.msra.mxu1 %v1892_v5  ;;  %2021 = vmatpush1.bf16.msra.mxu0 %v2020_v6  ;;  %v690_v5 = vld [vmem:[#allocation11 + $0xa08] sm:$0xff]  ;;  %v1912_v6 = vpack.c.bf16 %v675_v61, %v669_v60  ;;  %v2056_v60 = vpack.c.bf16 %v725_v53, %v719_v52  ;;  %v729_v61 = vld [vmem:[#allocation11 + $0xb40] sm:$0xff]  ;;  %v1304_v52 = vld [vmem:[#allocation15 + $0xa8] sm:$0xff] }
 0x29b   :  { %1895 = vmatprep.subr.bf16.mxu1 %v1894_v9  ;;  %2023 = vmatprep.subr.bf16.mxu0 %v2022_v10  ;;  %v687_v9 = vld [vmem:[#allocation11 + $0x9f0] sm:$0xff]  ;;  %v1914_v10 = vpack.c.bf16 %v688_v3, %v682_v2  ;;  %v2042_v12 = vpack.c.bf16 %v690_v5, %v684_v4  ;;  %v737_v2 = vld [vmem:[#allocation11 + $0xb80] sm:$0xff]  ;;  %v742_v3 = vld [vmem:[#allocation11 + $0xba8] sm:$0xff] }
 0x29c   :  { %v748_v4 = vld [vmem:[#allocation11 + $0xbd8] sm:$0xff] }
 0x29d   :  { %v744_v5 = vld [vmem:[#allocation11 + $0xbb8] sm:$0xff] }
 0x29e   :  { %1897 = vmatpush1.bf16.msra.mxu1 %v1896_v19  ;;  %2025 = vmatpush1.bf16.msra.mxu0 %v2024_v21  ;;  %v702_v19 = vld [vmem:[#allocation11 + $0xa68] sm:$0xff]  ;;  %v1916_v21 = vpack.c.bf16 %v687_v9, %v681_v8  ;;  %v2060_v8 = vpack.c.bf16 %v737_v2, %v731_v1  ;;  %v741_v9 = vld [vmem:[#allocation11 + $0xba0] sm:$0xff] }
 0x29f   :  { %1899 = vmatprep.subr.bf16.mxu1 %v1898_v24  ;;  %2027 = vmatprep.subr.bf16.mxu0 %v2026_v25  ;;  %v699_v24 = vld [vmem:[#allocation11 + $0xa50] sm:$0xff]  ;;  %v1918_v25 = vpack.c.bf16 %v700_v16, %v694_v15  ;;  %v2046_v27 = vpack.c.bf16 %v702_v19, %v696_v18  ;;  %v749_v15 = vld [vmem:[#allocation11 + $0xbe0] sm:$0xff]  ;;  %v374_v16 = vld [vmem:[#allocation11 + $0x28] sm:$0xff]  ;;  %v1936_v19 = vpack.c.bf16 %v747_v13, %v741_v9 }
 0x2a0   :  { %v380_v18 = vld [vmem:[#allocation11 + $0x58] sm:$0xff]  ;;  %v1307_v9 = vld [vmem:[#allocation15 + $0xc0] sm:$0xff] }
 0x2a1   :  { %v440_v13 = vld [vmem:[#allocation11 + $0x238] sm:$0xff] }
 0x2a2   :  { %1901 = vmatpush1.bf16.msra.mxu1 %v1900_v33  ;;  %2029 = vmatpush1.bf16.msra.mxu0 %v2028_v34  ;;  %v714_v33 = vld [vmem:[#allocation11 + $0xac8] sm:$0xff]  ;;  %v1920_v34 = vpack.c.bf16 %v699_v24, %v693_v23  ;;  %v373_v23 = vld [vmem:[#allocation11 + $0x20] sm:$0xff]  ;;  %v379_v24 = vld [vmem:[#allocation11 + $0x50] sm:$0xff] }
 0x2a3   :  { %1903 = vmatprep.subr.bf16.mxu1 %v1902_v37  ;;  %2031 = vmatprep.subr.bf16.mxu0 %v2030_v38  ;;  %v711_v37 = vld [vmem:[#allocation11 + $0xab0] sm:$0xff]  ;;  %v1922_v38 = vpack.c.bf16 %v712_v31, %v706_v30  ;;  %v2050_v39 = vpack.c.bf16 %v714_v33, %v708_v32  ;;  %v2068_v28 = vpack.c.bf16 %v379_v24, %v373_v23  ;;  %v385_v30 = vld [vmem:[#allocation11 + $0x80] sm:$0xff]  ;;  %v398_v32 = vld [vmem:[#allocation11 + $0xe8] sm:$0xff] }
 0x2a4   :  { %v391_v31 = vld [vmem:[#allocation11 + $0xb0] sm:$0xff]  ;;  %v404_v33 = vld [vmem:[#allocation11 + $0x118] sm:$0xff] }
 0x2a5   :  { %v439_v23 = vld [vmem:[#allocation11 + $0x230] sm:$0xff]  ;;  %v1309_v24 = vld [vmem:[#allocation15 + $0xd0] sm:$0xff] }
 0x2a6   :  { %1905 = vmatpush1.bf16.msra.mxu1 %v1904_v45  ;;  %2033 = vmatpush1.bf16.msra.mxu0 %v2032_v46  ;;  %v726_v45 = vld [vmem:[#allocation11 + $0xb28] sm:$0xff]  ;;  %v1924_v46 = vpack.c.bf16 %v711_v37, %v705_v36  ;;  %v1300_v37 = vld [vmem:[#allocation15 + $0x88] sm:$0xff] }
 0x2a7   :  { %1907 = vmatprep.subr.bf16.mxu1 %v1906_v49  ;;  %2035 = vmatprep.subr.bf16.mxu0 %v2034_v50  ;;  %v723_v49 = vld [vmem:[#allocation11 + $0xb10] sm:$0xff]  ;;  %v1926_v50 = vpack.c.bf16 %v724_v43, %v718_v42  ;;  %v2054_v51 = vpack.c.bf16 %v726_v45, %v720_v44  ;;  %v1301_v42 = vld [vmem:[#allocation15 + $0x90] sm:$0xff]  ;;  %v1302_v43 = vld [vmem:[#allocation15 + $0x98] sm:$0xff]  ;;  %v2074_v44 = vpack.c.bf16 %v404_v33, %v398_v32 }
 0x2a8   :  { %v1299_v36 = vld [vmem:[#allocation15 + $0x80] sm:$0xff]  ;;  %v1293_v32 = vld [vmem:[#allocation15 + $0x50] sm:$0xff]  ;;  %v1294_v33 = vld [vmem:[#allocation15 + $0x58] sm:$0xff] }
 0x2a9   :  { %v2194_v40 = vpack.c.bf16 %v1300_v37, %v1299_v36  ;;  %v451_v36 = vld [vmem:[#allocation11 + $0x290] sm:$0xff]  ;;  %v458_v37 = vld [vmem:[#allocation11 + $0x2c8] sm:$0xff] }
 0x2aa   :  { %1909 = vmatpush1.bf16.msra.mxu1 %v1908_v58  ;;  %2037 = vmatpush1.bf16.msra.mxu0 %v2036_v59  ;;  %v738_v58 = vld [vmem:[#allocation11 + $0xb88] sm:$0xff]  ;;  %v1928_v59 = vpack.c.bf16 %v723_v49, %v717_v48 }
 0x2ab   :  { %1911 = vmatprep.subr.bf16.mxu1 %v1910_v62  ;;  %2039 = vmatprep.subr.bf16.mxu0 %v2038_v63  ;;  %v735_v62 = vld [vmem:[#allocation11 + $0xb70] sm:$0xff]  ;;  %v1930_v63 = vpack.c.bf16 %v736_v55, %v730_v54  ;;  %v2058_v0 = vpack.c.bf16 %v738_v58, %v732_v56  ;;  %v1286_v48 = vld [vmem:[#allocation15 + $0x18] sm:$0xff] }
 0x2ac   :  { %v1303_v49 = vld [vmem:[#allocation15 + $0xa0] sm:$0xff]  ;;  %v409_v54 = vld [vmem:[#allocation11 + $0x140] sm:$0xff]  ;;  %v1288_v58 = vld [vmem:[#allocation15 + $0x28] sm:$0xff] }
 0x2ad   :  { %v2202_v55 = vpack.c.bf16 %v1304_v52, %v1303_v49  ;;  %v1287_v56 = vld [vmem:[#allocation15 + $0x20] sm:$0xff] }
 0x2ae   :  { %1913 = vmatpush1.bf16.msra.mxu1 %v1912_v6  ;;  %2041 = vmatpush1.bf16.msra.mxu0 %v2040_v7  ;;  %v750_v6 = vld [vmem:[#allocation11 + $0xbe8] sm:$0xff]  ;;  %v1932_v7 = vpack.c.bf16 %v735_v62, %v729_v61  ;;  %v1305_v61 = vld [vmem:[#allocation15 + $0xb0] sm:$0xff]  ;;  %v2204_v1 = vpack.c.bf16 %v1288_v58, %v1287_v56  ;;  %v475_v49 = vld [vmem:[#allocation11 + $0x350] sm:$0xff] }
 0x2af   :  { %1915 = vmatprep.subr.bf16.mxu1 %v1914_v10  ;;  %2043 = vmatprep.subr.bf16.mxu0 %v2042_v12  ;;  %v1934_v10 = vpack.c.bf16 %v748_v4, %v742_v3  ;;  %v2062_v12 = vpack.c.bf16 %v750_v6, %v744_v5  ;;  %v1306_v62 = vld [vmem:[#allocation15 + $0xb8] sm:$0xff]  ;;  %v1289_v5 = vld [vmem:[#allocation15 + $0x30] sm:$0xff] }
 0x2b0   :  { %v421_v3 = vld [vmem:[#allocation11 + $0x1a0] sm:$0xff]  ;;  %v2206_v4 = vpack.c.bf16 %v1306_v62, %v1305_v61  ;;  %v500_v56 = vld [vmem:[#allocation11 + $0x418] sm:$0xff]  ;;  %v499_v61 = vld [vmem:[#allocation11 + $0x410] sm:$0xff] }
 0x2b1   :  { %v1290_v6 = vld [vmem:[#allocation15 + $0x38] sm:$0xff] }
 0x2b2   :  { %1917 = vmatpush1.bf16.msra.mxu1 %v1916_v21  ;;  %2045 = vmatpush1.bf16.msra.mxu0 %v2044_v22  ;;  %v2064_v21 = vpack.c.bf16 %v749_v15, %v743_v14  ;;  %v2066_v22 = vpack.c.bf16 %v380_v18, %v374_v16  ;;  %v2208_v14 = vpack.c.bf16 %v1290_v6, %v1289_v5  ;;  %v433_v16 = vld [vmem:[#allocation11 + $0x200] sm:$0xff]  ;;  %v506_v62 = vld [vmem:[#allocation11 + $0x448] sm:$0xff]  ;;  %v524_v5 = vld [vmem:[#allocation11 + $0x4d8] sm:$0xff] }
 0x2b3   :  { %1919 = vmatprep.subr.bf16.mxu1 %v1918_v25  ;;  %2047 = vmatprep.subr.bf16.mxu0 %v2046_v27  ;;  %v386_v25 = vld [vmem:[#allocation11 + $0x88] sm:$0xff]  ;;  %v392_v27 = vld [vmem:[#allocation11 + $0xb8] sm:$0xff] }
 0x2b4   :  { %v2070_v29 = vpack.c.bf16 %v392_v27, %v386_v25  ;;  %v1310_v25 = vld [vmem:[#allocation15 + $0xd8] sm:$0xff] }
 0x2b5   :  { %v446_v27 = vld [vmem:[#allocation11 + $0x268] sm:$0xff] }
 0x2b6   :  { %1921 = vmatpush1.bf16.msra.mxu1 %v1920_v34  ;;  %2049 = vmatpush1.bf16.msra.mxu0 %v2048_v35  ;;  %v397_v34 = vld [vmem:[#allocation11 + $0xe0] sm:$0xff]  ;;  %v403_v35 = vld [vmem:[#allocation11 + $0x110] sm:$0xff] }
 0x2b7   :  { %1923 = vmatprep.subr.bf16.mxu1 %v1922_v38  ;;  %2051 = vmatprep.subr.bf16.mxu0 %v2050_v39  ;;  %v1283_v38 = vld [vmem:[#allocation15] sm:$0xff]  ;;  %v2072_v39 = vpack.c.bf16 %v391_v31, %v385_v30  ;;  %v2088_v30 = vpack.c.bf16 %v439_v23, %v433_v16  ;;  %v2214_v31 = vpack.c.bf16 %v1310_v25, %v1309_v24  ;;  %v541_v23 = vld [vmem:[#allocation11 + $0x560] sm:$0xff] }
 0x2b8   :  { %v2196_v45 = vpack.c.bf16 %v1284_v41, %v1283_v38  ;;  %v464_v38 = vld [vmem:[#allocation11 + $0x2f8] sm:$0xff]  ;;  %v535_v16 = vld [vmem:[#allocation11 + $0x530] sm:$0xff]  ;;  %v554_v25 = vld [vmem:[#allocation11 + $0x5c8] sm:$0xff] }
 0x2b9   :  { %v2094_v41 = vpack.c.bf16 %v464_v38, %v458_v37  ;;  %v547_v24 = vld [vmem:[#allocation11 + $0x590] sm:$0xff]  ;;  %v578_v38 = vld [vmem:[#allocation11 + $0x688] sm:$0xff] }
 0x2ba   :  { %1925 = vmatpush1.bf16.msra.mxu1 %v1924_v46  ;;  %2053 = vmatpush1.bf16.msra.mxu0 %v2052_v47  ;;  %v2198_v46 = vpack.c.bf16 %v1302_v43, %v1301_v42  ;;  %v1285_v47 = vld [vmem:[#allocation15 + $0x10] sm:$0xff]  ;;  %v463_v43 = vld [vmem:[#allocation11 + $0x2f0] sm:$0xff] }
 0x2bb   :  { %1927 = vmatprep.subr.bf16.mxu1 %v1926_v50  ;;  %2055 = vmatprep.subr.bf16.mxu0 %v2054_v51  ;;  %v410_v50 = vld [vmem:[#allocation11 + $0x148] sm:$0xff]  ;;  %v416_v51 = vld [vmem:[#allocation11 + $0x178] sm:$0xff]  ;;  %v2200_v53 = vpack.c.bf16 %v1286_v48, %v1285_v47  ;;  %v457_v42 = vld [vmem:[#allocation11 + $0x2c0] sm:$0xff] }
 0x2bc   :  { %v469_v48 = vld [vmem:[#allocation11 + $0x320] sm:$0xff]  ;;  %v571_v37 = vld [vmem:[#allocation11 + $0x650] sm:$0xff] }
 0x2bd   :  { %v2100_v52 = vpack.c.bf16 %v475_v49, %v469_v48  ;;  %v589_v48 = vld [vmem:[#allocation11 + $0x6e0] sm:$0xff]  ;;  %v595_v49 = vld [vmem:[#allocation11 + $0x710] sm:$0xff] }
 0x2be   :  { %1929 = vmatpush1.bf16.msra.mxu1 %v1928_v59  ;;  %2057 = vmatpush1.bf16.msra.mxu0 %v2056_v60  ;;  %v2078_v59 = vpack.c.bf16 %v416_v51, %v410_v50  ;;  %v415_v60 = vld [vmem:[#allocation11 + $0x170] sm:$0xff]  ;;  %v482_v50 = vld [vmem:[#allocation11 + $0x388] sm:$0xff]  ;;  %v488_v51 = vld [vmem:[#allocation11 + $0x3b8] sm:$0xff] }
 0x2bf   :  { %1931 = vmatprep.subr.bf16.mxu1 %v1930_v63  ;;  %2059 = vmatprep.subr.bf16.mxu0 %v2058_v0  ;;  %v422_v63 = vld [vmem:[#allocation11 + $0x1a8] sm:$0xff]  ;;  %v428_v0 = vld [vmem:[#allocation11 + $0x1d8] sm:$0xff]  ;;  %v2080_v2 = vpack.c.bf16 %v415_v60, %v409_v54  ;;  %v487_v54 = vld [vmem:[#allocation11 + $0x3b0] sm:$0xff] }
 0x2c0   :  { %v493_v60 = vld [vmem:[#allocation11 + $0x3e0] sm:$0xff] }
 0x2c2   :  { %1933 = vmatpush1.bf16.msra.mxu1 %v1932_v7  ;;  %2061 = vmatpush1.bf16.msra.mxu0 %v2060_v8  ;;  %v2082_v7 = vpack.c.bf16 %v428_v0, %v422_v63  ;;  %v427_v8 = vld [vmem:[#allocation11 + $0x1d0] sm:$0xff]  ;;  %v512_v63 = vld [vmem:[#allocation11 + $0x478] sm:$0xff]  ;;  %v2108_v0 = vpack.c.bf16 %v499_v61, %v493_v60  ;;  %v626_v60 = vld [vmem:[#allocation11 + $0x808] sm:$0xff] }
 0x2c3   :  { %1935 = vmatprep.subr.bf16.mxu1 %v1934_v10  ;;  %2063 = vmatprep.subr.bf16.mxu0 %v2062_v12  ;;  %v1308_v10 = vld [vmem:[#allocation15 + $0xc8] sm:$0xff]  ;;  %v434_v12 = vld [vmem:[#allocation11 + $0x208] sm:$0xff]  ;;  %v2084_v15 = vpack.c.bf16 %v427_v8, %v421_v3  ;;  %v517_v8 = vld [vmem:[#allocation11 + $0x4a0] sm:$0xff] }
 0x2c4   :  { %v2210_v18 = vpack.c.bf16 %v1308_v10, %v1307_v9  ;;  %v511_v3 = vld [vmem:[#allocation11 + $0x470] sm:$0xff]  ;;  %v530_v10 = vld [vmem:[#allocation11 + $0x508] sm:$0xff]  ;;  %v632_v61 = vld [vmem:[#allocation11 + $0x838] sm:$0xff] }
 0x2c5   :  { %v523_v9 = vld [vmem:[#allocation11 + $0x4d0] sm:$0xff] }
 0x2c6   :  { %1937 = vmatpush1.bf16.msra.mxu1 %v1936_v19  ;;  %2065 = vmatpush1.bf16.msra.mxu0 %v2064_v21  ;;  %v1291_v19 = vld [vmem:[#allocation15 + $0x40] sm:$0xff]  ;;  %v1292_v21 = vld [vmem:[#allocation15 + $0x48] sm:$0xff] }
 0x2c7   :  { %2067 = vmatprep.subr.bf16.mxu1 %v2066_v22  ;;  %2195 = vmatprep.subr.bf16.mxu0 %v2194_v40  ;;  %v2086_v22 = vpack.c.bf16 %v440_v13, %v434_v12  ;;  %v536_v12 = vld [vmem:[#allocation11 + $0x538] sm:$0xff]  ;;  %v2116_v13 = vpack.c.bf16 %v523_v9, %v517_v8  ;;  %v1295_v8 = vld [vmem:[#allocation15 + $0x60] sm:$0xff] }
 0x2c8   :  { %v1296_v9 = vld [vmem:[#allocation15 + $0x68] sm:$0xff] }
 0x2c9   :  { %911 = vmatmul.mubr.f32.vlgmr.msra.gmra.mrb[2].mxu1 %v2792_v20  ;;  %1053 = vmatmul.mubr.f32.vlgmr.msra.gmra.mrb[2].mxu0 %v2792_v20 }
 0x2ca   :  { %2069 = vmatpush1.bf16.msra.mxu1 %v2068_v28  ;;  %1123 = vmatprep.mubr.f32.mxu1 %v2790_v17  ;;  %v2076_v17 = vpack.c.bf16 %v403_v35, %v397_v34  ;;  %v452_v28 = vld [vmem:[#allocation11 + $0x298] sm:$0xff]  ;;  %v445_v35 = vld [vmem:[#allocation11 + $0x260] sm:$0xff] }
 0x2cb   :  { %2071 = vmatprep.subr.bf16.mxu1 %v2070_v29  ;;  %2197 = vmatpush3.bf16.msra.mxu0 %v2196_v45  ;;  %v2212_v29 = vpack.c.bf16 %v1292_v21, %v1291_v19  ;;  %v2090_v34 = vpack.c.bf16 %v452_v28, %v446_v27  ;;  %v2092_v40 = vpack.c.bf16 %v451_v36, %v445_v35  ;;  %v476_v45 = vld [vmem:[#allocation11 + $0x358] sm:$0xff]  ;;  %v565_v36 = vld [vmem:[#allocation11 + $0x620] sm:$0xff] }
 0x2cc   :  { %2199 = vmatprep.subr.bf16.mxu0 %v2198_v46  ;;  %v2096_v46 = vpack.c.bf16 %v463_v43, %v457_v42  ;;  %v548_v19 = vld [vmem:[#allocation11 + $0x598] sm:$0xff]  ;;  %v2124_v28 = vpack.c.bf16 %v547_v24, %v541_v23  ;;  %v577_v42 = vld [vmem:[#allocation11 + $0x680] sm:$0xff]  ;;  %v583_v43 = vld [vmem:[#allocation11 + $0x6b0] sm:$0xff] }
 0x2cd   :  { %v560_v27 = vld [vmem:[#allocation11 + $0x5f8] sm:$0xff]  ;;  %v1298_v24 = vld [vmem:[#allocation15 + $0x78] sm:$0xff] }
 0x2ce   :  { %2073 = vmatpush1.bf16.msra.mxu1 %v2072_v39  ;;  %v2216_v39 = vpack.c.bf16 %v1294_v33, %v1293_v32  ;;  %v566_v32 = vld [vmem:[#allocation11 + $0x628] sm:$0xff]  ;;  %v572_v33 = vld [vmem:[#allocation11 + $0x658] sm:$0xff] }
 0x2cf   :  { %2075 = vmatprep.subr.bf16.mxu1 %v2074_v44  ;;  %2201 = vmatpush3.bf16.msra.mxu0 %v2200_v53  ;;  %v470_v44 = vld [vmem:[#allocation11 + $0x328] sm:$0xff]  ;;  %v2102_v53 = vpack.c.bf16 %v488_v51, %v482_v50  ;;  %v2130_v35 = vpack.c.bf16 %v572_v33, %v566_v32  ;;  %v608_v51 = vld [vmem:[#allocation11 + $0x778] sm:$0xff] }
 0x2d0   :  { %2203 = vmatprep.subr.bf16.mxu0 %v2202_v55  ;;  %v2098_v47 = vpack.c.bf16 %v476_v45, %v470_v44  ;;  %v494_v55 = vld [vmem:[#allocation11 + $0x3e8] sm:$0xff]  ;;  %v596_v45 = vld [vmem:[#allocation11 + $0x718] sm:$0xff] }
 0x2d1   :  { %v590_v44 = vld [vmem:[#allocation11 + $0x6e8] sm:$0xff]  ;;  %v1297_v23 = vld [vmem:[#allocation15 + $0x70] sm:$0xff]  ;;  %v1332_v33 = vld [vmem:[#allocation15 + $0x188] sm:$0xff] }
 0x2d2   :  { %2077 = vmatpush1.bf16.msra.mxu1 %v2076_v17  ;;  %v481_v17 = vld [vmem:[#allocation11 + $0x380] sm:$0xff]  ;;  %v602_v50 = vld [vmem:[#allocation11 + $0x748] sm:$0xff] }
 0x2d3   :  { %2079 = vmatprep.subr.bf16.mxu1 %v2078_v59  ;;  %2205 = vmatpush3.bf16.msra.mxu0 %v2204_v1  ;;  %v2104_v58 = vpack.c.bf16 %v487_v54, %v481_v17  ;;  %v2106_v59 = vpack.c.bf16 %v500_v56, %v494_v55  ;;  %v2110_v1 = vpack.c.bf16 %v512_v63, %v506_v62  ;;  %v601_v17 = vld [vmem:[#allocation11 + $0x740] sm:$0xff]  ;;  %v607_v54 = vld [vmem:[#allocation11 + $0x770] sm:$0xff]  ;;  %v614_v55 = vld [vmem:[#allocation11 + $0x7a8] sm:$0xff] }
 0x2d4   :  { %2207 = vmatprep.subr.bf16.mxu0 %v2206_v4  ;;  %v518_v4 = vld [vmem:[#allocation11 + $0x4a8] sm:$0xff]  ;;  %v620_v56 = vld [vmem:[#allocation11 + $0x7d8] sm:$0xff]  ;;  %v2150_v63 = vpack.c.bf16 %v632_v61, %v626_v60  ;;  %v715_v60 = vld [vmem:[#allocation11 + $0xad0] sm:$0xff] }
 0x2d5   :  { %v1331_v32 = vld [vmem:[#allocation15 + $0x180] sm:$0xff] }
 0x2d6   :  { %2081 = vmatpush1.bf16.msra.mxu1 %v2080_v2  ;;  %v505_v2 = vld [vmem:[#allocation11 + $0x440] sm:$0xff]  ;;  %v722_v61 = vld [vmem:[#allocation11 + $0xb08] sm:$0xff] }
 0x2d7   :  { %2083 = vmatprep.subr.bf16.mxu1 %v2082_v7  ;;  %2209 = vmatpush3.bf16.msra.mxu0 %v2208_v14  ;;  %v2112_v6 = vpack.c.bf16 %v511_v3, %v505_v2  ;;  %v2114_v7 = vpack.c.bf16 %v524_v5, %v518_v4  ;;  %v2118_v14 = vpack.c.bf16 %v536_v12, %v530_v10  ;;  %v638_v2 = vld [vmem:[#allocation11 + $0x868] sm:$0xff]  ;;  %v644_v3 = vld [vmem:[#allocation11 + $0x898] sm:$0xff]  ;;  %v637_v12 = vld [vmem:[#allocation11 + $0x860] sm:$0xff] }
 0x2d8   :  { %2211 = vmatprep.subr.bf16.mxu0 %v2210_v18  ;;  %v542_v18 = vld [vmem:[#allocation11 + $0x568] sm:$0xff]  ;;  %v1312_v5 = vld [vmem:[#allocation15 + $0xe8] sm:$0xff]  ;;  %v2154_v10 = vpack.c.bf16 %v644_v3, %v638_v2 }
 0x2d9   :  { %v1311_v4 = vld [vmem:[#allocation15 + $0xe0] sm:$0xff] }
 0x2da   :  { %2085 = vmatpush1.bf16.msra.mxu1 %v2084_v15  ;;  %v529_v15 = vld [vmem:[#allocation11 + $0x500] sm:$0xff]  ;;  %v727_v2 = vld [vmem:[#allocation11 + $0xb30] sm:$0xff]  ;;  %v734_v3 = vld [vmem:[#allocation11 + $0xb68] sm:$0xff] }
 0x2db   :  { %2087 = vmatprep.subr.bf16.mxu1 %v2086_v22  ;;  %2213 = vmatpush3.bf16.msra.mxu0 %v2212_v29  ;;  %v2120_v21 = vpack.c.bf16 %v535_v16, %v529_v15  ;;  %v2122_v22 = vpack.c.bf16 %v548_v19, %v542_v18  ;;  %v2126_v29 = vpack.c.bf16 %v560_v27, %v554_v25  ;;  %v650_v15 = vld [vmem:[#allocation11 + $0x8c8] sm:$0xff]  ;;  %v656_v16 = vld [vmem:[#allocation11 + $0x8f8] sm:$0xff]  ;;  %v649_v27 = vld [vmem:[#allocation11 + $0x8c0] sm:$0xff] }
 0x2dc   :  { %2215 = vmatprep.subr.bf16.mxu0 %v2214_v31  ;;  %v559_v31 = vld [vmem:[#allocation11 + $0x5f0] sm:$0xff]  ;;  %v1313_v18 = vld [vmem:[#allocation15 + $0xf0] sm:$0xff]  ;;  %v1314_v19 = vld [vmem:[#allocation15 + $0xf8] sm:$0xff]  ;;  %v2158_v25 = vpack.c.bf16 %v656_v16, %v650_v15 }
 0x2dd   :  { %v751_v15 = vld [vmem:[#allocation11 + $0xbf0] sm:$0xff] }
 0x2de   :  { %2089 = vmatpush1.bf16.msra.mxu1 %v2088_v30  ;;  %v553_v30 = vld [vmem:[#allocation11 + $0x5c0] sm:$0xff] }
 0x2df   :  { %2091 = vmatprep.subr.bf16.mxu1 %v2090_v34  ;;  %2217 = vmatpush3.bf16.msra.mxu0 %v2216_v39  ;;  %v2128_v34 = vpack.c.bf16 %v559_v31, %v553_v30  ;;  %v584_v39 = vld [vmem:[#allocation11 + $0x6b8] sm:$0xff]  ;;  %v662_v30 = vld [vmem:[#allocation11 + $0x928] sm:$0xff] }
 0x2e0   :  { %v668_v31 = vld [vmem:[#allocation11 + $0x958] sm:$0xff] }
 0x2e2   :  { %2093 = vmatpush1.bf16.msra.mxu1 %v2092_v40  ;;  %v2132_v40 = vpack.c.bf16 %v571_v37, %v565_v36  ;;  %v2162_v36 = vpack.c.bf16 %v668_v31, %v662_v30  ;;  %v661_v37 = vld [vmem:[#allocation11 + $0x920] sm:$0xff] }
 0x2e3   :  { %2095 = vmatprep.subr.bf16.mxu1 %v2094_v41  ;;  %v2134_v41 = vpack.c.bf16 %v584_v39, %v578_v38  ;;  %v667_v38 = vld [vmem:[#allocation11 + $0x950] sm:$0xff]  ;;  %v674_v39 = vld [vmem:[#allocation11 + $0x988] sm:$0xff] }
 0x2e6   :  { %2097 = vmatpush1.bf16.msra.mxu1 %v2096_v46  ;;  %v2136_v46 = vpack.c.bf16 %v583_v43, %v577_v42  ;;  %v673_v43 = vld [vmem:[#allocation11 + $0x980] sm:$0xff] }
 0x2e7   :  { %2099 = vmatprep.subr.bf16.mxu1 %v2098_v47  ;;  %v2138_v47 = vpack.c.bf16 %v596_v45, %v590_v44  ;;  %v679_v44 = vld [vmem:[#allocation11 + $0x9b0] sm:$0xff]  ;;  %v686_v45 = vld [vmem:[#allocation11 + $0x9e8] sm:$0xff] }
 0x2ea   :  { %2101 = vmatpush1.bf16.msra.mxu1 %v2100_v52  ;;  %v2140_v52 = vpack.c.bf16 %v595_v49, %v589_v48  ;;  %v685_v49 = vld [vmem:[#allocation11 + $0x9e0] sm:$0xff] }
 0x2eb   :  { %2103 = vmatprep.subr.bf16.mxu1 %v2102_v53  ;;  %v2142_v53 = vpack.c.bf16 %v608_v51, %v602_v50  ;;  %v691_v50 = vld [vmem:[#allocation11 + $0xa10] sm:$0xff]  ;;  %v698_v51 = vld [vmem:[#allocation11 + $0xa48] sm:$0xff] }
 0x2ee   :  { %2105 = vmatpush1.bf16.msra.mxu1 %v2104_v58  ;;  %v2146_v58 = vpack.c.bf16 %v620_v56, %v614_v55  ;;  %v703_v55 = vld [vmem:[#allocation11 + $0xa70] sm:$0xff]  ;;  %v710_v56 = vld [vmem:[#allocation11 + $0xaa8] sm:$0xff] }
 0x2ef   :  { %2107 = vmatprep.subr.bf16.mxu1 %v2106_v59  ;;  %v619_v59 = vld [vmem:[#allocation11 + $0x7d0] sm:$0xff] }
 0x2f2   :  { %2109 = vmatpush1.bf16.msra.mxu1 %v2108_v0  ;;  %v625_v0 = vld [vmem:[#allocation11 + $0x800] sm:$0xff] }
 0x2f3   :  { %2111 = vmatprep.subr.bf16.mxu1 %v2110_v1  ;;  %v631_v1 = vld [vmem:[#allocation11 + $0x830] sm:$0xff] }
 0x2f6   :  { %2113 = vmatpush1.bf16.msra.mxu1 %v2112_v6  ;;  %v2152_v6 = vpack.c.bf16 %v631_v1, %v625_v0  ;;  %v721_v1 = vld [vmem:[#allocation11 + $0xb00] sm:$0xff] }
 0x2f7   :  { %2115 = vmatprep.subr.bf16.mxu1 %v2114_v7  ;;  %v2218_v7 = vpack.c.bf16 %v1312_v5, %v1311_v4  ;;  %v740_v4 = vld [vmem:[#allocation11 + $0xb98] sm:$0xff]  ;;  %v2184_v5 = vpack.c.bf16 %v727_v2, %v721_v1  ;;  %v1323_v1 = vld [vmem:[#allocation15 + $0x140] sm:$0xff] }
 0x2f8   :  { %v1324_v2 = vld [vmem:[#allocation15 + $0x148] sm:$0xff] }
 0x2f9   :  { %2219 = vmatprep.subr.bf16.mxu0 %v2218_v7  ;;  %v733_v7 = vld [vmem:[#allocation11 + $0xb60] sm:$0xff] }
 0x2fa   :  { %2117 = vmatpush1.bf16.msra.mxu1 %v2116_v13  ;;  %v643_v13 = vld [vmem:[#allocation11 + $0x890] sm:$0xff] }
 0x2fb   :  { %2119 = vmatprep.subr.bf16.mxu1 %v2118_v14  ;;  %v2220_v14 = vpack.c.bf16 %v1296_v9, %v1295_v8  ;;  %v739_v8 = vld [vmem:[#allocation11 + $0xb90] sm:$0xff]  ;;  %v746_v9 = vld [vmem:[#allocation11 + $0xbc8] sm:$0xff] }
 0x2fd   :  { %2221 = vmatpush3.bf16.msra.mxu0 %v2220_v14  ;;  %v745_v14 = vld [vmem:[#allocation11 + $0xbc0] sm:$0xff] }
 0x2fe   :  { %2121 = vmatpush1.bf16.msra.mxu1 %v2120_v21  ;;  %v2156_v21 = vpack.c.bf16 %v643_v13, %v637_v12  ;;  %v2188_v12 = vpack.c.bf16 %v739_v8, %v733_v7  ;;  %v2192_v16 = vpack.c.bf16 %v751_v15, %v745_v14  ;;  %v1325_v8 = vld [vmem:[#allocation15 + $0x150] sm:$0xff] }
 0x2ff   :  { %2123 = vmatprep.subr.bf16.mxu1 %v2122_v22  ;;  %v2222_v22 = vpack.c.bf16 %v1314_v19, %v1313_v18  ;;  %v1205_v18 = vsub.s32 0, %v2783_v57  ;;  %v2811_v19 = vld [vmem:[#allocation12] sm:$0x3f] }
 0x301   :  { %2223 = vmatprep.subr.bf16.mxu0 %v2222_v22  ;;  %v1217_v22 = vsub.s32 3, %v2783_v57 }
 0x302   :  { %2125 = vmatpush1.bf16.msra.mxu1 %v2124_v28  ;;  %v655_v28 = vld [vmem:[#allocation11 + $0x8f0] sm:$0xff] }
 0x303   :  { %2127 = vmatprep.subr.bf16.mxu1 %v2126_v29  ;;  %v2224_v29 = vpack.c.bf16 %v1298_v24, %v1297_v23  ;;  %v2815_v23 = vld [vmem:[#allocation14] sm:$0x3f]  ;;  %v1206_v24 = vrot.slane %v2811_v19, %v1205_v18 }
 0x304   :  { %v1256_v31 = vrot.slane %v2815_v23, %v1217_v22 }
 0x305   :  { %2225 = vmatpush3.bf16.msra.mxu0 %v2224_v29 }
 0x306   :  { %2129 = vmatpush1.bf16.msra.mxu1 %v2128_v34  ;;  %v2160_v34 = vpack.c.bf16 %v655_v28, %v649_v27  ;;  %v1218_v27 = vrot.slane %v2811_v19, %v1217_v22  ;;  %v1244_v28 = vrot.slane %v2815_v23, %v1205_v18  ;;  %v1328_v18 = vld [vmem:[#allocation15 + $0x168] sm:$0xff]  ;;  %v1346_v22 = vld [vmem:[#allocation15 + $0x1f8] sm:$0xff] }
 0x307   :  { %2131 = vmatprep.subr.bf16.mxu1 %v2130_v35  ;;  %v2226_v35 = vpack.c.bf16 %v1332_v33, %v1331_v32 }
 0x309   :  { %1124 = vmatmul.mubr.f32.vlgmr.msra.gmra.mrb[4].mxu1 %v2786_v11  ;;  %v2144_v11 = vpack.c.bf16 %v607_v54, %v601_v17  ;;  %2227 = vmatprep.subr.bf16.mxu0 %v2226_v35  ;;  %v697_v54 = vld [vmem:[#allocation11 + $0xa40] sm:$0xff] }
 0x30a   :  { %2133 = vmatpush1.bf16.msra.mxu1 %v2132_v40  ;;  %1194 = vmatprep.mubr.f32.mxu1 %v2798_v26  ;;  %v613_v26 = vld [vmem:[#allocation11 + $0x7a0] sm:$0xff]  ;;  %v680_v40 = vld [vmem:[#allocation11 + $0x9b8] sm:$0xff] }
 0x30b   :  { %2135 = vmatprep.subr.bf16.mxu1 %v2134_v41  ;;  %v2148_v62 = vpack.c.bf16 %v619_v59, %v613_v26  ;;  %v2164_v41 = vpack.c.bf16 %v667_v38, %v661_v37  ;;  %v2166_v42 = vpack.c.bf16 %v680_v40, %v674_v39  ;;  %v709_v59 = vld [vmem:[#allocation11 + $0xaa0] sm:$0xff]  ;;  %v1315_v38 = vld [vmem:[#allocation15 + $0x100] sm:$0xff]  ;;  %v1316_v39 = vld [vmem:[#allocation15 + $0x108] sm:$0xff] }
 0x30e   :  { %2137 = vmatpush1.bf16.msra.mxu1 %v2136_v46  ;;  %v692_v46 = vld [vmem:[#allocation11 + $0xa18] sm:$0xff] }
 0x30f   :  { %2139 = vmatprep.subr.bf16.mxu1 %v2138_v47  ;;  %v2168_v47 = vpack.c.bf16 %v679_v44, %v673_v43  ;;  %v2170_v48 = vpack.c.bf16 %v692_v46, %v686_v45  ;;  %v1334_v43 = vld [vmem:[#allocation15 + $0x198] sm:$0xff]  ;;  %v2228_v45 = vpack.c.bf16 %v1316_v39, %v1315_v38  ;;  %v1365_v38 = vld [vmem:[#allocation15 + $0x290] sm:$0xff] }
 0x310   :  { %v1366_v39 = vld [vmem:[#allocation15 + $0x298] sm:$0xff] }
 0x312   :  { %2141 = vmatpush1.bf16.msra.mxu1 %v2140_v52  ;;  %v704_v52 = vld [vmem:[#allocation11 + $0xa78] sm:$0xff] }
 0x313   :  { %2143 = vmatprep.subr.bf16.mxu1 %v2142_v53  ;;  %v2172_v53 = vpack.c.bf16 %v691_v50, %v685_v49  ;;  %v2174_v17 = vpack.c.bf16 %v704_v52, %v698_v51  ;;  %v1318_v49 = vld [vmem:[#allocation15 + $0x118] sm:$0xff]  ;;  %v1335_v51 = vld [vmem:[#allocation15 + $0x1a0] sm:$0xff]  ;;  %v1336_v52 = vld [vmem:[#allocation15 + $0x1a8] sm:$0xff] }
 0x316   :  { %2145 = vmatpush1.bf16.msra.mxu1 %v2144_v11  ;;  %v716_v11 = vld [vmem:[#allocation11 + $0xad8] sm:$0xff] }
 0x317   :  { %2147 = vmatprep.subr.bf16.mxu1 %v2146_v58  ;;  %v2176_v58 = vpack.c.bf16 %v703_v55, %v697_v54  ;;  %v2178_v26 = vpack.c.bf16 %v716_v11, %v710_v56  ;;  %v1319_v54 = vld [vmem:[#allocation15 + $0x120] sm:$0xff]  ;;  %v1320_v55 = vld [vmem:[#allocation15 + $0x128] sm:$0xff]  ;;  %v1337_v56 = vld [vmem:[#allocation15 + $0x1b0] sm:$0xff] }
 0x318   :  { %v1338_v11 = vld [vmem:[#allocation15 + $0x1b8] sm:$0xff] }
 0x31a   :  { %2149 = vmatpush1.bf16.msra.mxu1 %v2148_v62  ;;  %v728_v62 = vld [vmem:[#allocation11 + $0xb38] sm:$0xff] }
 0x31b   :  { %2151 = vmatprep.subr.bf16.mxu1 %v2150_v63  ;;  %v2180_v63 = vpack.c.bf16 %v715_v60, %v709_v59  ;;  %v2182_v0 = vpack.c.bf16 %v728_v62, %v722_v61  ;;  %v1321_v59 = vld [vmem:[#allocation15 + $0x130] sm:$0xff]  ;;  %v1322_v60 = vld [vmem:[#allocation15 + $0x138] sm:$0xff]  ;;  %v1339_v61 = vld [vmem:[#allocation15 + $0x1c0] sm:$0xff] }
 0x31c   :  { %v1340_v62 = vld [vmem:[#allocation15 + $0x1c8] sm:$0xff] }
 0x31e   :  { %2153 = vmatpush1.bf16.msra.mxu1 %v2152_v6  ;;  %v2186_v6 = vpack.c.bf16 %v740_v4, %v734_v3  ;;  %v1341_v3 = vld [vmem:[#allocation15 + $0x1d0] sm:$0xff]  ;;  %v1342_v4 = vld [vmem:[#allocation15 + $0x1d8] sm:$0xff] }
 0x31f   :  { %2155 = vmatprep.subr.bf16.mxu1 %v2154_v10  ;;  %v752_v10 = vld [vmem:[#allocation11 + $0xbf8] sm:$0xff]  ;;  %v2246_v7 = vpack.c.bf16 %v1342_v4, %v1341_v3 }
 0x320   :  { %v2190_v13 = vpack.c.bf16 %v752_v10, %v746_v9  ;;  %v1326_v9 = vld [vmem:[#allocation15 + $0x158] sm:$0xff]  ;;  %v1343_v10 = vld [vmem:[#allocation15 + $0x1e0] sm:$0xff]  ;;  %v1376_v3 = vld [vmem:[#allocation15 + $0x2e8] sm:$0xff] }
 0x322   :  { %2157 = vmatpush1.bf16.msra.mxu1 %v2156_v21  ;;  %v1209_v21 = vsub.s32 1, %v2783_v57 }
 0x323   :  { %2159 = vmatprep.subr.bf16.mxu1 %v2158_v25 }
 0x324   :  { %v1210_v25 = vrot.slane %v2811_v19, %v1209_v21  ;;  %v1248_v30 = vrot.slane %v2815_v23, %v1209_v21  ;;  %v1345_v21 = vld [vmem:[#allocation15 + $0x1f0] sm:$0xff] }
 0x326   :  { %2161 = vmatpush1.bf16.msra.mxu1 %v2160_v34 }
 0x327   :  { %2163 = vmatprep.subr.bf16.mxu1 %v2162_v36 }
 0x32a   :  { %2165 = vmatpush1.bf16.msra.mxu1 %v2164_v41 }
 0x32b   :  { %2167 = vmatprep.subr.bf16.mxu1 %v2166_v42  ;;  %v1333_v42 = vld [vmem:[#allocation15 + $0x190] sm:$0xff] }
 0x32e   :  { %2169 = vmatpush1.bf16.msra.mxu1 %v2168_v47  ;;  %v2230_v47 = vpack.c.bf16 %v1334_v43, %v1333_v42  ;;  %v1349_v42 = vld [vmem:[#allocation15 + $0x210] sm:$0xff]  ;;  %v1350_v43 = vld [vmem:[#allocation15 + $0x218] sm:$0xff] }
 0x32f   :  { %2171 = vmatprep.subr.bf16.mxu1 %v2170_v48  ;;  %v1317_v48 = vld [vmem:[#allocation15 + $0x110] sm:$0xff] }
 0x332   :  { %2173 = vmatpush1.bf16.msra.mxu1 %v2172_v53  ;;  %v2232_v53 = vpack.c.bf16 %v1318_v49, %v1317_v48  ;;  %v1351_v48 = vld [vmem:[#allocation15 + $0x220] sm:$0xff]  ;;  %v1352_v49 = vld [vmem:[#allocation15 + $0x228] sm:$0xff] }
 0x333   :  { %2175 = vmatprep.subr.bf16.mxu1 %v2174_v17  ;;  %v2234_v17 = vpack.c.bf16 %v1336_v52, %v1335_v51  ;;  %v1370_v51 = vld [vmem:[#allocation15 + $0x2b8] sm:$0xff]  ;;  %v2268_v52 = vpack.c.bf16 %v1352_v49, %v1351_v48 }
 0x336   :  { %2177 = vmatpush1.bf16.msra.mxu1 %v2176_v58  ;;  %v2236_v58 = vpack.c.bf16 %v1320_v55, %v1319_v54  ;;  %v1354_v54 = vld [vmem:[#allocation15 + $0x238] sm:$0xff]  ;;  %v1371_v55 = vld [vmem:[#allocation15 + $0x2c0] sm:$0xff] }
 0x337   :  { %2179 = vmatprep.subr.bf16.mxu1 %v2178_v26  ;;  %v2238_v26 = vpack.c.bf16 %v1338_v11, %v1337_v56  ;;  %v1372_v56 = vld [vmem:[#allocation15 + $0x2c8] sm:$0xff] }
 0x33a   :  { %2181 = vmatpush1.bf16.msra.mxu1 %v2180_v63  ;;  %v2240_v63 = vpack.c.bf16 %v1322_v60, %v1321_v59  ;;  %v1356_v59 = vld [vmem:[#allocation15 + $0x248] sm:$0xff]  ;;  %v1373_v60 = vld [vmem:[#allocation15 + $0x2d0] sm:$0xff] }
 0x33b   :  { %2183 = vmatprep.subr.bf16.mxu1 %v2182_v0  ;;  %v2242_v0 = vpack.c.bf16 %v1340_v62, %v1339_v61  ;;  %v1374_v61 = vld [vmem:[#allocation15 + $0x2d8] sm:$0xff] }
 0x33e   :  { %2185 = vmatpush1.bf16.msra.mxu1 %v2184_v5  ;;  %v2244_v5 = vpack.c.bf16 %v1324_v2, %v1323_v1  ;;  %v1358_v1 = vld [vmem:[#allocation15 + $0x258] sm:$0xff]  ;;  %v1375_v2 = vld [vmem:[#allocation15 + $0x2e0] sm:$0xff] }
 0x33f   :  { %2187 = vmatprep.subr.bf16.mxu1 %v2186_v6  ;;  %v1213_v6 = vsub.s32 2, %v2783_v57 }
 0x341   :  { %v1214_v14 = vrot.slane %v2811_v19, %v1213_v6 }
 0x342   :  { %2189 = vmatpush1.bf16.msra.mxu1 %v2188_v12  ;;  %v1344_v12 = vld [vmem:[#allocation15 + $0x1e8] sm:$0xff] }
 0x343   :  { %2191 = vmatprep.subr.bf16.mxu1 %v2190_v13  ;;  %v2248_v13 = vpack.c.bf16 %v1326_v9, %v1325_v8  ;;  %v2250_v15 = vpack.c.bf16 %v1344_v12, %v1343_v10  ;;  %v1377_v8 = vld [vmem:[#allocation15 + $0x2f0] sm:$0xff]  ;;  %v1378_v9 = vld [vmem:[#allocation15 + $0x2f8] sm:$0xff] }
 0x344   :  { %v2286_v12 = vpack.c.bf16 %v1378_v9, %v1377_v8 }
 0x346   :  { %2193 = vmatpush1.bf16.msra.mxu1 %v2192_v16  ;;  %v1327_v16 = vld [vmem:[#allocation15 + $0x160] sm:$0xff] }
 0x349   :  { %1195 = vmatmul.mubr.f32.vlgmr.msra.gmra.mrb[4].mxu1 %v2792_v20 }
 0x39c   :  { %v912_v29 = vpop.f32.mrb[2].mxu1  ;;  %v2821_v20 = vpop.f32.mrb[2].mxu0 }
 0x39d   :  { %v1233_v32 = vmul.f32 %v1206_v24, %v912_v29  ;;  %v914_v33 = vpop.f32.mrb[3].mxu1  ;;  %v1056_v34 = vpop.f32.mrb[3].mxu0  ;;  %v2252_v24 = vpack.c.bf16 %v1328_v18, %v1327_v16  ;;  %v1329_v29 = vld [vmem:[#allocation15 + $0x170] sm:$0xff]  ;;  %v1221_v16 = vsub.s32 4, %v2783_v57  ;;  %v1225_v18 = vsub.s32 5, %v2783_v57 }
 0x39e   :  { %v1234_v35 = vmul.f32 %v1210_v25, %v914_v33  ;;  %v1236_v36 = vmul.f32 %v1218_v27, %v1056_v34  ;;  %v1235_v25 = vmul.f32 %v1214_v14, %v2821_v20  ;;  %v1252_v27 = vrot.slane %v2815_v23, %v1213_v6  ;;  %v1359_v6 = vld [vmem:[#allocation15 + $0x260] sm:$0xff]  ;;  %v1362_v14 = vld [vmem:[#allocation15 + $0x278] sm:$0xff] }
 0x39f   :  { %v1271_v37 = vadd.f32 %v1244_v28, %v1233_v32  ;;  %v2254_v28 = vpack.c.bf16 %v1346_v22, %v1345_v21  ;;  %v1364_v32 = vld [vmem:[#allocation15 + $0x288] sm:$0xff]  ;;  %v1222_v21 = vrot.slane %v2811_v19, %v1221_v16  ;;  %v1226_v22 = vrot.slane %v2811_v19, %v1225_v18 }
 0x3a0   :  { %v1272_v40 = vadd.f32 %v1248_v30, %v1234_v35  ;;  %v1274_v41 = vadd.f32 %v1256_v31, %v1236_v36  ;;  %v1330_v30 = vld [vmem:[#allocation15 + $0x178] sm:$0xff]  ;;  %v1363_v31 = vld [vmem:[#allocation15 + $0x280] sm:$0xff]  ;;  %v1273_v34 = vadd.f32 %v1252_v27, %v1235_v25  ;;  %v1264_v27 = vrot.slane %v2815_v23, %v1225_v18 }
 0x3a1   :  { %v1277_v46 = vmax.f32 %v1271_v37, 0.0  ;;  %v2256_v33 = vpack.c.bf16 %v1330_v30, %v1329_v29  ;;  %v2258_v35 = vpack.c.bf16 %v1364_v32, %v1363_v31  ;;  %v1347_v36 = vld [vmem:[#allocation15 + $0x200] sm:$0xff]  ;;  %v1348_v37 = vld [vmem:[#allocation15 + $0x208] sm:$0xff] }
 0x3a2   :  { %v1278_v44 = vmax.f32 %v1272_v40, 0.0  ;;  %v1280_v50 = vmax.f32 %v1274_v41, 0.0  ;;  %v2260_v40 = vpack.c.bf16 %v1348_v37, %v1347_v36  ;;  %v1279_v20 = vmax.f32 %v1273_v34, 0.0  ;;  %v1621_v37 = vld [vmem:[#allocation17] ss:$0 sm:$0xff] }
 0x3a3   :  { %v2262_v41 = vpack.c.bf16 %v1366_v39, %v1365_v38 }
 0x3a4   :  { %1450 = vmatprep.mubr.f32.mxu0 %v1278_v44  ;;  %v1367_v44 = vld [vmem:[#allocation15 + $0x2a0] sm:$0xff] }
 0x3a5   :  { %1451 = vmatmul.mubr.f32.vlgmr.msra.gmra.mrb[4].mxu0 %v1277_v46  ;;  %v2264_v46 = vpack.c.bf16 %v1350_v43, %v1349_v42 }
 0x3a6   :  { %2229 = vmatpush3.bf16.msra.mxu0 %v2228_v45  ;;  %1520 = vmatprep.mubr.f32.mxu0 %v1280_v50  ;;  %v1368_v45 = vld [vmem:[#allocation15 + $0x2a8] sm:$0xff]  ;;  %v1369_v50 = vld [vmem:[#allocation15 + $0x2b0] sm:$0xff] }
 0x3a7   :  { %2231 = vmatprep.subr.bf16.mxu0 %v2230_v47  ;;  %v2266_v47 = vpack.c.bf16 %v1368_v45, %v1367_v44 }
 0x3aa   :  { %2233 = vmatpush3.bf16.msra.mxu0 %v2232_v53  ;;  %v2270_v53 = vpack.c.bf16 %v1370_v51, %v1369_v50 }
 0x3ab   :  { %2235 = vmatprep.subr.bf16.mxu0 %v2234_v17  ;;  %v1353_v17 = vld [vmem:[#allocation15 + $0x230] sm:$0xff] }
 0x3ac   :  { %v2272_v11 = vpack.c.bf16 %v1354_v54, %v1353_v17 }
 0x3ae   :  { %2237 = vmatpush3.bf16.msra.mxu0 %v2236_v58  ;;  %v2274_v58 = vpack.c.bf16 %v1372_v56, %v1371_v55 }
 0x3af   :  { %2239 = vmatprep.subr.bf16.mxu0 %v2238_v26  ;;  %v1355_v26 = vld [vmem:[#allocation15 + $0x240] sm:$0xff] }
 0x3b0   :  { %v2276_v62 = vpack.c.bf16 %v1356_v59, %v1355_v26 }
 0x3b2   :  { %2241 = vmatpush3.bf16.msra.mxu0 %v2240_v63  ;;  %v2278_v63 = vpack.c.bf16 %v1374_v61, %v1373_v60 }
 0x3b3   :  { %2243 = vmatprep.subr.bf16.mxu0 %v2242_v0  ;;  %v1357_v0 = vld [vmem:[#allocation15 + $0x250] sm:$0xff] }
 0x3b4   :  { %v2280_v4 = vpack.c.bf16 %v1358_v1, %v1357_v0 }
 0x3b6   :  { %2245 = vmatpush3.bf16.msra.mxu0 %v2244_v5  ;;  %v2282_v5 = vpack.c.bf16 %v1376_v3, %v1375_v2 }
 0x3b7   :  { %2247 = vmatprep.subr.bf16.mxu0 %v2246_v7  ;;  %v1360_v7 = vld [vmem:[#allocation15 + $0x268] sm:$0xff] }
 0x3b8   :  { %v2284_v10 = vpack.c.bf16 %v1360_v7, %v1359_v6 }
 0x3ba   :  { %2249 = vmatpush3.bf16.msra.mxu0 %v2248_v13  ;;  %v1361_v13 = vld [vmem:[#allocation15 + $0x270] sm:$0xff] }
 0x3bb   :  { %2251 = vmatprep.subr.bf16.mxu0 %v2250_v15  ;;  %v2288_v15 = vpack.c.bf16 %v1362_v14, %v1361_v13 }
 0x3be   :  { %2253 = vmatpush3.bf16.msra.mxu0 %v2252_v24  ;;  %v1260_v24 = vrot.slane %v2815_v23, %v1221_v16 }
 0x3bf   :  { %2255 = vmatprep.subr.bf16.mxu0 %v2254_v28 }
 0x3c2   :  { %2257 = vmatpush3.bf16.msra.mxu0 %v2256_v33 }
 0x3c3   :  { %2259 = vmatprep.subr.bf16.mxu0 %v2258_v35 }
 0x3c5   :  { %1521 = vmatmul.mubr.f32.vlgmr.msra.gmra.mrb[6].mxu0 %v1279_v20 }
 0x3c6   :  { %2261 = vmatpush3.bf16.msra.mxu0 %v2260_v40 }
 0x3c7   :  { %2263 = vmatprep.subr.bf16.mxu0 %v2262_v41 }
 0x3ca   :  { %2265 = vmatpush3.bf16.msra.mxu0 %v2264_v46 }
 0x3cb   :  { %2267 = vmatprep.subr.bf16.mxu0 %v2266_v47 }
 0x3ce   :  { %2269 = vmatpush3.bf16.msra.mxu0 %v2268_v52 }
 0x3cf   :  { %2271 = vmatprep.subr.bf16.mxu0 %v2270_v53 }
 0x3d2   :  { %2273 = vmatpush3.bf16.msra.mxu0 %v2272_v11 }
 0x3d3   :  { %2275 = vmatprep.subr.bf16.mxu0 %v2274_v58 }
 0x3d6   :  { %2277 = vmatpush3.bf16.msra.mxu0 %v2276_v62 }
 0x3d7   :  { %2279 = vmatprep.subr.bf16.mxu0 %v2278_v63 }
 0x3da   :  { %2281 = vmatpush3.bf16.msra.mxu0 %v2280_v4 }
 0x3db   :  { %2283 = vmatprep.subr.bf16.mxu0 %v2282_v5 }
 0x3de   :  { %2285 = vmatpush3.bf16.msra.mxu0 %v2284_v10 }
 0x3df   :  { %2287 = vmatprep.subr.bf16.mxu0 %v2286_v12 }
 0x3e2   :  { %2289 = vmatpush3.bf16.msra.mxu0 %v2288_v15 }
 0x41c   :  { %v1196_v25 = vpop.f32.mrb[4].mxu1 }
 0x41d   :  { %v1237_v28 = vmul.f32 %v1222_v21, %v1196_v25  ;;  %v1198_v29 = vpop.f32.mrb[5].mxu1 }
 0x41e   :  { %v1238_v30 = vmul.f32 %v1226_v22, %v1198_v29 }
 0x41f   :  { %v1275_v31 = vadd.f32 %v1260_v24, %v1237_v28 }
 0x420   :  { %v1276_v32 = vadd.f32 %v1264_v27, %v1238_v30 }
 0x421   :  { %v1281_v34 = vmax.f32 %v1275_v31, 0.0 }
 0x422   :  { %v1282_v33 = vmax.f32 %v1276_v32, 0.0 }
 0x424   :  { %1590 = vmatprep.mubr.f32.mxu0 %v1282_v33 }
 0x425   :  { %1591 = vmatmul.mubr.f32.vlgmr.msra.gmra.mrb[8].mxu0 %v1281_v34 }
 0x478   :  { %v1673_v35 = vpop.f32.mrb[4].mxu0 }
 0x479   :  { %v1674_v57 = vpop.f32.mrb[5].mxu0 }
 0x47a   :  { %v1675_v36 = vadd.f32 %v1674_v57, %v1673_v35 }
 0x47c   :  { %v1453_v39 = vadd.f32 %v1675_v36, %v1621_v37 }
 0x498   :  { %v1708_v38 = vpop.f32.mrb[6].mxu0 }
 0x499   :  { %v1709_v19 = vpop.f32.mrb[7].mxu0 }
 0x49a   :  { %v1710_v40 = vadd.f32 %v1709_v19, %v1708_v38 }
 0x49c   :  { %v1523_v20 = vadd.f32 %v1710_v40, %v1453_v39 }
 0x4f8   :  { %v1743_v41 = vpop.f32.mrb[8].mxu0 }
 0x4f9   :  { %v1744_v23 = vpop.f32.mrb[9].mxu0 }
 0x4fa   :  { %v1745_v42 = vadd.f32 %v1744_v23, %v1743_v41 }
 0x4fc   :  { %v1593_v43 = vadd.f32 %v1745_v42, %v1523_v20 }
 0x4fe   :  { %1596 = vst [vmem:[#allocation18] sm:$0x3] %v1593_v43 }
 0x4ff   :  { %2524 = shalt.err (!%p2521_p6)
}
 0x500   :  { %s2525_s15 = scalar_lea.hbm %s2857_s10, 32 }
 0x501   :  { %p2526_p7 = scmp.ne.s32.totalorder %s2857_s10, %s2525_s15  ;;  %p2529_p8 = scmp.lt.u32.totalorder %s2525_s15, %s2857_s10 }
 0x503   :  { %p2531_p9 = pnand %p2529_p8, %p2526_p7 }
 0x505   :  { %2534 = shalt.err (!%p2531_p9)
}
 0x506   :  { %1606 = dma.vmem_to_hbm [thread:$0]  %s1604_s21, 32, %s2857_s10, [#allocation5]  }
 0x507   :  { %2545 = dma.done.wait [#allocation5], 32  }
 0x508   :  { %2546 = vsyncadd [#allocation5], 4294967264 }
 0x509   :  { %1610 = vsyncpa [#allocation4], 1 }
 0x50a   :  { %1611 = vsyncpa [#allocation7], 1 }
 0x50b   :  { %1612 = vsyncpa [#allocation10], 1 }
 0x50c   :  { %1613 = vsyncpa [#allocation13], 1 }
 0x50d   :  { %1614 = vsyncpa [#allocation16], 1 }
 0x50e   :  { %1615 = vsyncpa [#allocation5], 1 }

</bundles_post_ra>
